<compile_context>
chip_gen: v6e
topology: v6e:2x2x1
jax: 0.10.0
libtpu: 0.0.40
codegen_flags: <defaults>
</compile_context>

<pallas_src>
import functools

import jax
import jax.numpy as jnp
from jax.experimental import pallas as pl
from jax.experimental.pallas import tpu as pltpu

# ---------------------------- problem sizes ---------------------------------
B = 2                 # batch per forward() call
C, H, W = 3, 16, 16   # image dims (NCHW like PyTorch)
Z_DIM = 32
A_DIM = 8
D_IN = C * H * W
H1, H2, H3 = 128, 256, 512
BN_EPS = 1e-5

# packed bias/BN-parameter vector: 128-lane-aligned segments inside one array
VEC_OFF = {
    "b_enc": 0,
    "b1": 128, "g1": 256, "be1": 384,
    "b2": 512, "g2": 768, "be2": 1024,
    "b3": 1280, "g3": 1792, "be3": 2304,
    "b4": 2816,
}
VEC_LEN = 2944  # 2816 + one padded 128-lane slot for b4


def _unpack_vec(v):
    """Slice the packed (1, VEC_LEN) vector (works on a Ref or an array)."""
    def seg(name, n):
        off = VEC_OFF[name]
        return v[:, off:off + n]
    return (seg("b_enc", Z_DIM),
            seg("b1", H1), seg("g1", H1), seg("be1", H1),
            seg("b2", H2), seg("g2", H2), seg("be2", H2),
            seg("b3", H3), seg("g3", H3), seg("be3", H3),
            seg("b4", A_DIM))


# --------------------------- shared forward math -----------------------------
def _actor_math(xs, w_enc, w1, w2, w3, w4, vecs, batch):
    """xs: (2*batch, D_IN) bf16 = [x_flat; x_next_flat].  Returns (batch, A_DIM) f32."""
    f32 = jnp.float32
    bf16 = jnp.bfloat16
    (b_enc, b1, g1, be1, b2, g2, be2, b3, g3, be3, b4) = vecs

    # stand-in shared encoder: one stacked matmul over [x; x_next]
    zz = jnp.dot(xs, w_enc, preferred_element_type=f32) + b_enc       # (2B, Z)
    # concat([z, z_next], dim=1) -> single K=2Z matmul for layer 1
    zcat = jnp.concatenate([zz[:batch], zz[batch:]], axis=1)          # (B, 2Z)

    def bn_lrelu(h, gamma, beta):
        # training-mode BatchNorm1d (biased batch var), single-pass form
        mean = jnp.mean(h, axis=0, keepdims=True)
        var = jnp.mean(h * h, axis=0, keepdims=True) - mean * mean
        s = gamma * jax.lax.rsqrt(var + BN_EPS)
        hn = h * s + (beta - mean * s)
        return jnp.where(hn > 0, hn, 0.2 * hn)                        # LeakyReLU(0.2)

    h = jnp.dot(zcat.astype(bf16), w1, preferred_element_type=f32) + b1
    h = bn_lrelu(h, g1, be1)
    h = jnp.dot(h.astype(bf16), w2, preferred_element_type=f32) + b2
    h = bn_lrelu(h, g2, be2)
    h = jnp.dot(h.astype(bf16), w3, preferred_element_type=f32) + b3
    h = bn_lrelu(h, g3, be3)
    h = jnp.tanh(jnp.dot(h.astype(bf16), w4, preferred_element_type=f32) + b4)
    return (h / 100.0).astype(f32)


# ------------------------------- kernel --------------------------------------
def actor_kernel(x_ref, wenc_ref, w1_ref, w2_ref, w3_ref, w4_ref, vec_ref,
                 out_ref, *, batch):
    vecs = _unpack_vec(vec_ref)
    out_ref[...] = _actor_math(
        x_ref[...], wenc_ref[...], w1_ref[...], w2_ref[...], w3_ref[...],
        w4_ref[...], vecs, batch)


# ------------------------------- wrapper --------------------------------------
def actor_forward(x, x_next, params):
    """x, x_next: (B, C, H, W) or (T, B, C, H, W) float32.

    Returns squeeze(f(concat(enc(x), enc(x_next)))) / 100 per timestep.
    The T axis (if present) becomes the Pallas grid; weights stay VMEM-resident
    across it.
    """
    single = (x.ndim == 4)
    if single:
        x = x[None]
        x_next = x_next[None]
    T, bsz = x.shape[0], x.shape[1]
    d_in = x.shape[2] * x.shape[3] * x.shape[4]

    # stack x / x_next along the batch dim -> one encoder matmul per step
    x_stack = jnp.concatenate(
        [x.reshape(T, bsz, d_in), x_next.reshape(T, bsz, d_in)], axis=1
    ).astype(jnp.bfloat16)                                            # (T, 2B, D_IN)

    kernel = functools.partial(actor_kernel, batch=bsz)

    out = pl.pallas_call(
        kernel,
        out_shape=jax.ShapeDtypeStruct((T, bsz, A_DIM), jnp.float32),
        grid=(T,),
        in_specs=[
            # streamed per grid step
            pl.BlockSpec((None, 2 * bsz, d_in), lambda t: (t, 0, 0)),
            # weights/packed-vector: constant block index -> VMEM-resident
            pl.BlockSpec(params["w_enc"].shape, lambda t: (0, 0)),
            pl.BlockSpec(params["w1"].shape, lambda t: (0, 0)),
            pl.BlockSpec(params["w2"].shape, lambda t: (0, 0)),
            pl.BlockSpec(params["w3"].shape, lambda t: (0, 0)),
            pl.BlockSpec(params["w4"].shape, lambda t: (0, 0)),
            pl.BlockSpec(params["vec"].shape, lambda t: (0, 0)),
        ],
        out_specs=pl.BlockSpec((None, bsz, A_DIM), lambda t: (t, 0, 0)),
        compiler_params=pltpu.CompilerParams(
            dimension_semantics=("parallel",)),   # lets v7x shard T over both TCs
    )(x_stack, params["w_enc"], params["w1"], params["w2"],
      params["w3"], params["w4"], params["vec"])

    if single:
        out = out[0]
    return jnp.squeeze(out)   # mirrors torch .squeeze() (shape-unstable if B==1)


# --------------------------- plain-JAX reference ------------------------------
def actor_reference(x, x_next, params):
    single = (x.ndim == 4)
    if single:
        x = x[None]
        x_next = x_next[None]
    T, bsz = x.shape[0], x.shape[1]
    d_in = x.shape[2] * x.shape[3] * x.shape[4]
    x_stack = jnp.concatenate(
        [x.reshape(T, bsz, d_in), x_next.reshape(T, bsz, d_in)], axis=1
    ).astype(jnp.bfloat16)
    vecs = _unpack_vec(params["vec"])

    def step(xs):
        return _actor_math(xs, params["w_enc"], params["w1"], params["w2"],
                           params["w3"], params["w4"], vecs, bsz)

    out = jax.vmap(step)(x_stack)
    if single:
        out = out[0]
    return jnp.squeeze(out)


# --------------------------- parameter init ----------------------------------
def init_params(key):
    def linear(key, fan_in, fan_out):
        kw, kb = jax.random.split(key)
        bound = 1.0 / (fan_in ** 0.5)
        w = jax.random.uniform(kw, (fan_in, fan_out), jnp.float32, -bound, bound)
        b = jax.random.uniform(kb, (1, fan_out), jnp.float32, -bound, bound)
        return w, b

    keys = jax.random.split(key, 5)
    w_enc, b_enc = linear(keys[0], D_IN, Z_DIM)
    w1, b1 = linear(keys[1], 2 * Z_DIM, H1)
    w2, b2 = linear(keys[2], H1, H2)
    w3, b3 = linear(keys[3], H2, H3)
    w4, b4 = linear(keys[4], H3, A_DIM)

    vec = jnp.zeros((1, VEC_LEN), jnp.float32)

    def put(v, name, arr):
        off = VEC_OFF[name]
        return v.at[:, off:off + arr.shape[1]].set(arr)

    vec = put(vec, "b_enc", b_enc)
    vec = put(vec, "b1", b1)
    vec = put(vec, "g1", jnp.ones((1, H1), jnp.float32))
    vec = put(vec, "be1", jnp.zeros((1, H1), jnp.float32))
    vec = put(vec, "b2", b2)
    vec = put(vec, "g2", jnp.ones((1, H2), jnp.float32))
    vec = put(vec, "be2", jnp.zeros((1, H2), jnp.float32))
    vec = put(vec, "b3", b3)
    vec = put(vec, "g3", jnp.ones((1, H3), jnp.float32))
    vec = put(vec, "be3", jnp.zeros((1, H3), jnp.float32))
    vec = put(vec, "b4", b4)

    return {
        "w_enc": w_enc.astype(jnp.bfloat16),
        "w1": w1.astype(jnp.bfloat16),   # merged [W1_top; W1_bottom] for concat([z, z_next])
        "w2": w2.astype(jnp.bfloat16),
        "w3": w3.astype(jnp.bfloat16),
        "w4": w4.astype(jnp.bfloat16),
        "vec": vec,                      # packed biases + BN gamma/beta (f32)
    }


if __name__ == "__main__":
    key = jax.random.PRNGKey(0)
    k_p, k_x, k_xn = jax.random.split(key, 3)

    params = init_params(k_p)

    # rollout of T timesteps -> grid=(T,) with weights resident across steps
    T = 8
    xs = jax.random.normal(k_x, (T, B, C, H, W), jnp.float32)
    xns = jax.random.normal(k_xn, (T, B, C, H, W), jnp.float32)

    out = actor_forward(xs, xns, params)
    jax.block_until_ready(out)
    assert out.shape == (T, B, A_DIM)
    assert bool(jnp.all(jnp.isfinite(out)))

    ref = actor_reference(xs, xns, params)
    assert bool(jnp.allclose(out, ref, atol=5e-4, rtol=1e-2))

    # single (x, x_next) call — matches the PyTorch forward() signature
    out1 = actor_forward(xs[0], xns[0], params)
    jax.block_until_ready(out1)
    assert out1.shape == (B, A_DIM)
    assert bool(jnp.allclose(out1, out[0], atol=5e-4))

    print("KERNEL_OK")
</pallas_src>

<mosaic_0001>
module attributes {stable_mosaic.version = 11 : i64} {
  func.func @actor_kernel(%arg0: i32, %arg1: memref<1x4x768xbf16, #tpu.memory_space<vmem>>, %arg2: memref<768x32xbf16, #tpu.memory_space<vmem>>, %arg3: memref<64x128xbf16, #tpu.memory_space<vmem>>, %arg4: memref<128x256xbf16, #tpu.memory_space<vmem>>, %arg5: memref<256x512xbf16, #tpu.memory_space<vmem>>, %arg6: memref<512x8xbf16, #tpu.memory_space<vmem>>, %arg7: memref<1x2944xf32, #tpu.memory_space<vmem>>, %arg8: memref<1x2x8xf32, #tpu.memory_space<vmem>>) attributes {dimension_semantics = [#tpu.dimension_semantics<parallel>], iteration_bounds = array<i64: 8>, scalar_prefetch = 0 : i64, scratch_operands = 0 : i64, tpu.core_type = #tpu.core_type<tc>, window_params = [{transform_indices = @transform_0, window_bounds = array<i64: 1, 4, 768>}, {pipeline_mode = #tpu.pipeline_mode<synchronous>, transform_indices = @transform_1, window_bounds = array<i64: 768, 32>}, {pipeline_mode = #tpu.pipeline_mode<synchronous>, transform_indices = @transform_2, window_bounds = array<i64: 64, 128>}, {pipeline_mode = #tpu.pipeline_mode<synchronous>, transform_indices = @transform_3, window_bounds = array<i64: 128, 256>}, {pipeline_mode = #tpu.pipeline_mode<synchronous>, transform_indices = @transform_4, window_bounds = array<i64: 256, 512>}, {pipeline_mode = #tpu.pipeline_mode<synchronous>, transform_indices = @transform_5, window_bounds = array<i64: 512, 8>}, {pipeline_mode = #tpu.pipeline_mode<synchronous>, transform_indices = @transform_6, window_bounds = array<i64: 1, 2944>}, {transform_indices = @transform_7, window_bounds = array<i64: 1, 2, 8>}]} {
    %c0 = arith.constant 0 : index
    %c0_0 = arith.constant 0 : index
    %0 = vector.load %arg7[%c0, %c0_0] : memref<1x2944xf32, #tpu.memory_space<vmem>>, vector<1x32xf32>
    %c0_1 = arith.constant 0 : index
    %c128 = arith.constant 128 : index
    %1 = vector.load %arg7[%c0_1, %c128] : memref<1x2944xf32, #tpu.memory_space<vmem>>, vector<1x128xf32>
    %c0_2 = arith.constant 0 : index
    %c256 = arith.constant 256 : index
    %2 = vector.load %arg7[%c0_2, %c256] : memref<1x2944xf32, #tpu.memory_space<vmem>>, vector<1x128xf32>
    %c0_3 = arith.constant 0 : index
    %c384 = arith.constant 384 : index
    %3 = vector.load %arg7[%c0_3, %c384] : memref<1x2944xf32, #tpu.memory_space<vmem>>, vector<1x128xf32>
    %c0_4 = arith.constant 0 : index
    %c512 = arith.constant 512 : index
    %4 = vector.load %arg7[%c0_4, %c512] : memref<1x2944xf32, #tpu.memory_space<vmem>>, vector<1x256xf32>
    %c0_5 = arith.constant 0 : index
    %c768 = arith.constant 768 : index
    %5 = vector.load %arg7[%c0_5, %c768] : memref<1x2944xf32, #tpu.memory_space<vmem>>, vector<1x256xf32>
    %c0_6 = arith.constant 0 : index
    %c1024 = arith.constant 1024 : index
    %6 = vector.load %arg7[%c0_6, %c1024] : memref<1x2944xf32, #tpu.memory_space<vmem>>, vector<1x256xf32>
    %c0_7 = arith.constant 0 : index
    %c1280 = arith.constant 1280 : index
    %7 = vector.load %arg7[%c0_7, %c1280] : memref<1x2944xf32, #tpu.memory_space<vmem>>, vector<1x512xf32>
    %c0_8 = arith.constant 0 : index
    %c1792 = arith.constant 1792 : index
    %8 = vector.load %arg7[%c0_8, %c1792] : memref<1x2944xf32, #tpu.memory_space<vmem>>, vector<1x512xf32>
    %c0_9 = arith.constant 0 : index
    %c2304 = arith.constant 2304 : index
    %9 = vector.load %arg7[%c0_9, %c2304] : memref<1x2944xf32, #tpu.memory_space<vmem>>, vector<1x512xf32>
    %c0_10 = arith.constant 0 : index
    %c2816 = arith.constant 2816 : index
    %10 = vector.load %arg7[%c0_10, %c2816] : memref<1x2944xf32, #tpu.memory_space<vmem>>, vector<1x8xf32>
    %c0_11 = arith.constant 0 : index
    %c0_12 = arith.constant 0 : index
    %c0_13 = arith.constant 0 : index
    %11 = vector.load %arg1[%c0_11, %c0_12, %c0_13] : memref<1x4x768xbf16, #tpu.memory_space<vmem>>, vector<1x4x768xbf16>
    %12 = vector.shape_cast %11 : vector<1x4x768xbf16> to vector<4x768xbf16>
    %c0_14 = arith.constant 0 : index
    %c0_15 = arith.constant 0 : index
    %13 = vector.load %arg2[%c0_14, %c0_15] : memref<768x32xbf16, #tpu.memory_space<vmem>>, vector<768x32xbf16>
    %c0_16 = arith.constant 0 : index
    %c0_17 = arith.constant 0 : index
    %14 = vector.load %arg3[%c0_16, %c0_17] : memref<64x128xbf16, #tpu.memory_space<vmem>>, vector<64x128xbf16>
    %c0_18 = arith.constant 0 : index
    %c0_19 = arith.constant 0 : index
    %15 = vector.load %arg4[%c0_18, %c0_19] : memref<128x256xbf16, #tpu.memory_space<vmem>>, vector<128x256xbf16>
    %c0_20 = arith.constant 0 : index
    %c0_21 = arith.constant 0 : index
    %16 = vector.load %arg5[%c0_20, %c0_21] : memref<256x512xbf16, #tpu.memory_space<vmem>>, vector<256x512xbf16>
    %c0_22 = arith.constant 0 : index
    %c0_23 = arith.constant 0 : index
    %17 = vector.load %arg6[%c0_22, %c0_23] : memref<512x8xbf16, #tpu.memory_space<vmem>>, vector<512x8xbf16>
    %cst = arith.constant dense<0.000000e+00> : vector<4x32xf32>
    %18 = tpu.matmul %12, %13, %cst {dimension_numbers = #tpu.dot_dimension_numbers<[1], [0], [0], [1], [0, 0, 1, 1], [], []>} : vector<4x768xbf16>, vector<768x32xbf16>, vector<4x32xf32> -> vector<4x32xf32>
    %19 = vector.broadcast %0 : vector<1x32xf32> to vector<4x32xf32>
    %20 = arith.addf %18, %19 : vector<4x32xf32>
    %21 = vector.extract_strided_slice %20 {offsets = [0, 0], sizes = [2, 32], strides = [1, 1]} : vector<4x32xf32> to vector<2x32xf32>
    %22 = vector.extract_strided_slice %20 {offsets = [2, 0], sizes = [2, 32], strides = [1, 1]} : vector<4x32xf32> to vector<2x32xf32>
    %23 = tpu.concatenate %21, %22 in 1 : vector<2x32xf32>, vector<2x32xf32> -> vector<2x64xf32>
    %24 = arith.truncf %23 : vector<2x64xf32> to vector<2x64xbf16>
    %cst_24 = arith.constant dense<0.000000e+00> : vector<2x128xf32>
    %25 = tpu.matmul %24, %14, %cst_24 {dimension_numbers = #tpu.dot_dimension_numbers<[1], [0], [0], [1], [0, 0, 1, 1], [], []>} : vector<2x64xbf16>, vector<64x128xbf16>, vector<2x128xf32> -> vector<2x128xf32>
    %26 = vector.broadcast %1 : vector<1x128xf32> to vector<2x128xf32>
    %27 = arith.addf %25, %26 : vector<2x128xf32>
    %cst_25 = arith.constant dense<0.000000e+00> : vector<128xf32>
    %28 = vector.multi_reduction <add>, %27, %cst_25 [0] : vector<2x128xf32> to vector<128xf32>
    %29 = vector.shape_cast %28 : vector<128xf32> to vector<1x128xf32>
    %cst_26 = arith.constant 2.000000e+00 : f32
    %30 = vector.broadcast %cst_26 : f32 to vector<1x128xf32>
    %31 = arith.divf %29, %30 : vector<1x128xf32>
    %32 = arith.mulf %27, %27 : vector<2x128xf32>
    %cst_27 = arith.constant dense<0.000000e+00> : vector<128xf32>
    %33 = vector.multi_reduction <add>, %32, %cst_27 [0] : vector<2x128xf32> to vector<128xf32>
    %34 = vector.shape_cast %33 : vector<128xf32> to vector<1x128xf32>
    %cst_28 = arith.constant 2.000000e+00 : f32
    %35 = vector.broadcast %cst_28 : f32 to vector<1x128xf32>
    %36 = arith.divf %34, %35 : vector<1x128xf32>
    %37 = arith.mulf %31, %31 : vector<1x128xf32>
    %38 = arith.subf %36, %37 : vector<1x128xf32>
    %cst_29 = arith.constant 9.99999974E-6 : f32
    %39 = vector.broadcast %cst_29 : f32 to vector<1x128xf32>
    %40 = arith.addf %38, %39 : vector<1x128xf32>
    %41 = math.rsqrt %40 : vector<1x128xf32>
    %42 = arith.mulf %2, %41 : vector<1x128xf32>
    %43 = vector.broadcast %42 : vector<1x128xf32> to vector<2x128xf32>
    %44 = arith.mulf %27, %43 : vector<2x128xf32>
    %45 = arith.mulf %31, %42 : vector<1x128xf32>
    %46 = arith.subf %3, %45 : vector<1x128xf32>
    %47 = vector.broadcast %46 : vector<1x128xf32> to vector<2x128xf32>
    %48 = arith.addf %44, %47 : vector<2x128xf32>
    %cst_30 = arith.constant 0.000000e+00 : f32
    %49 = vector.broadcast %cst_30 : f32 to vector<2x128xf32>
    %50 = arith.cmpf ogt, %48, %49 : vector<2x128xf32>
    %cst_31 = arith.constant 2.000000e-01 : f32
    %51 = vector.broadcast %cst_31 : f32 to vector<2x128xf32>
    %52 = arith.mulf %51, %48 : vector<2x128xf32>
    %53 = arith.select %50, %48, %52 : vector<2x128xi1>, vector<2x128xf32>
    %54 = arith.truncf %53 : vector<2x128xf32> to vector<2x128xbf16>
    %cst_32 = arith.constant dense<0.000000e+00> : vector<2x256xf32>
    %55 = tpu.matmul %54, %15, %cst_32 {dimension_numbers = #tpu.dot_dimension_numbers<[1], [0], [0], [1], [0, 0, 1, 1], [], []>} : vector<2x128xbf16>, vector<128x256xbf16>, vector<2x256xf32> -> vector<2x256xf32>
    %56 = vector.broadcast %4 : vector<1x256xf32> to vector<2x256xf32>
    %57 = arith.addf %55, %56 : vector<2x256xf32>
    %cst_33 = arith.constant dense<0.000000e+00> : vector<256xf32>
    %58 = vector.multi_reduction <add>, %57, %cst_33 [0] : vector<2x256xf32> to vector<256xf32>
    %59 = vector.shape_cast %58 : vector<256xf32> to vector<1x256xf32>
    %cst_34 = arith.constant 2.000000e+00 : f32
    %60 = vector.broadcast %cst_34 : f32 to vector<1x256xf32>
    %61 = arith.divf %59, %60 : vector<1x256xf32>
    %62 = arith.mulf %57, %57 : vector<2x256xf32>
    %cst_35 = arith.constant dense<0.000000e+00> : vector<256xf32>
    %63 = vector.multi_reduction <add>, %62, %cst_35 [0] : vector<2x256xf32> to vector<256xf32>
    %64 = vector.shape_cast %63 : vector<256xf32> to vector<1x256xf32>
    %cst_36 = arith.constant 2.000000e+00 : f32
    %65 = vector.broadcast %cst_36 : f32 to vector<1x256xf32>
    %66 = arith.divf %64, %65 : vector<1x256xf32>
    %67 = arith.mulf %61, %61 : vector<1x256xf32>
    %68 = arith.subf %66, %67 : vector<1x256xf32>
    %cst_37 = arith.constant 9.99999974E-6 : f32
    %69 = vector.broadcast %cst_37 : f32 to vector<1x256xf32>
    %70 = arith.addf %68, %69 : vector<1x256xf32>
    %71 = math.rsqrt %70 : vector<1x256xf32>
    %72 = arith.mulf %5, %71 : vector<1x256xf32>
    %73 = vector.broadcast %72 : vector<1x256xf32> to vector<2x256xf32>
    %74 = arith.mulf %57, %73 : vector<2x256xf32>
    %75 = arith.mulf %61, %72 : vector<1x256xf32>
    %76 = arith.subf %6, %75 : vector<1x256xf32>
    %77 = vector.broadcast %76 : vector<1x256xf32> to vector<2x256xf32>
    %78 = arith.addf %74, %77 : vector<2x256xf32>
    %cst_38 = arith.constant 0.000000e+00 : f32
    %79 = vector.broadcast %cst_38 : f32 to vector<2x256xf32>
    %80 = arith.cmpf ogt, %78, %79 : vector<2x256xf32>
    %cst_39 = arith.constant 2.000000e-01 : f32
    %81 = vector.broadcast %cst_39 : f32 to vector<2x256xf32>
    %82 = arith.mulf %81, %78 : vector<2x256xf32>
    %83 = arith.select %80, %78, %82 : vector<2x256xi1>, vector<2x256xf32>
    %84 = arith.truncf %83 : vector<2x256xf32> to vector<2x256xbf16>
    %cst_40 = arith.constant dense<0.000000e+00> : vector<2x512xf32>
    %85 = tpu.matmul %84, %16, %cst_40 {dimension_numbers = #tpu.dot_dimension_numbers<[1], [0], [0], [1], [0, 0, 1, 1], [], []>} : vector<2x256xbf16>, vector<256x512xbf16>, vector<2x512xf32> -> vector<2x512xf32>
    %86 = vector.broadcast %7 : vector<1x512xf32> to vector<2x512xf32>
    %87 = arith.addf %85, %86 : vector<2x512xf32>
    %cst_41 = arith.constant dense<0.000000e+00> : vector<512xf32>
    %88 = vector.multi_reduction <add>, %87, %cst_41 [0] : vector<2x512xf32> to vector<512xf32>
    %89 = vector.shape_cast %88 : vector<512xf32> to vector<1x512xf32>
    %cst_42 = arith.constant 2.000000e+00 : f32
    %90 = vector.broadcast %cst_42 : f32 to vector<1x512xf32>
    %91 = arith.divf %89, %90 : vector<1x512xf32>
    %92 = arith.mulf %87, %87 : vector<2x512xf32>
    %cst_43 = arith.constant dense<0.000000e+00> : vector<512xf32>
    %93 = vector.multi_reduction <add>, %92, %cst_43 [0] : vector<2x512xf32> to vector<512xf32>
    %94 = vector.shape_cast %93 : vector<512xf32> to vector<1x512xf32>
    %cst_44 = arith.constant 2.000000e+00 : f32
    %95 = vector.broadcast %cst_44 : f32 to vector<1x512xf32>
    %96 = arith.divf %94, %95 : vector<1x512xf32>
    %97 = arith.mulf %91, %91 : vector<1x512xf32>
    %98 = arith.subf %96, %97 : vector<1x512xf32>
    %cst_45 = arith.constant 9.99999974E-6 : f32
    %99 = vector.broadcast %cst_45 : f32 to vector<1x512xf32>
    %100 = arith.addf %98, %99 : vector<1x512xf32>
    %101 = math.rsqrt %100 : vector<1x512xf32>
    %102 = arith.mulf %8, %101 : vector<1x512xf32>
    %103 = vector.broadcast %102 : vector<1x512xf32> to vector<2x512xf32>
    %104 = arith.mulf %87, %103 : vector<2x512xf32>
    %105 = arith.mulf %91, %102 : vector<1x512xf32>
    %106 = arith.subf %9, %105 : vector<1x512xf32>
    %107 = vector.broadcast %106 : vector<1x512xf32> to vector<2x512xf32>
    %108 = arith.addf %104, %107 : vector<2x512xf32>
    %cst_46 = arith.constant 0.000000e+00 : f32
    %109 = vector.broadcast %cst_46 : f32 to vector<2x512xf32>
    %110 = arith.cmpf ogt, %108, %109 : vector<2x512xf32>
    %cst_47 = arith.constant 2.000000e-01 : f32
    %111 = vector.broadcast %cst_47 : f32 to vector<2x512xf32>
    %112 = arith.mulf %111, %108 : vector<2x512xf32>
    %113 = arith.select %110, %108, %112 : vector<2x512xi1>, vector<2x512xf32>
    %114 = arith.truncf %113 : vector<2x512xf32> to vector<2x512xbf16>
    %cst_48 = arith.constant dense<0.000000e+00> : vector<2x8xf32>
    %115 = tpu.matmul %114, %17, %cst_48 {dimension_numbers = #tpu.dot_dimension_numbers<[1], [0], [0], [1], [0, 0, 1, 1], [], []>} : vector<2x512xbf16>, vector<512x8xbf16>, vector<2x8xf32> -> vector<2x8xf32>
    %116 = vector.broadcast %10 : vector<1x8xf32> to vector<2x8xf32>
    %117 = arith.addf %115, %116 : vector<2x8xf32>
    %118 = math.tanh %117 : vector<2x8xf32>
    %cst_49 = arith.constant 1.000000e+02 : f32
    %119 = vector.broadcast %cst_49 : f32 to vector<2x8xf32>
    %120 = arith.divf %118, %119 : vector<2x8xf32>
    %c0_50 = arith.constant 0 : index
    %c0_51 = arith.constant 0 : index
    %c0_52 = arith.constant 0 : index
    %121 = vector.load %arg8[%c0_50, %c0_51, %c0_52] : memref<1x2x8xf32, #tpu.memory_space<vmem>>, vector<1x2x8xf32>
    %122 = vector.shape_cast %121 : vector<1x2x8xf32> to vector<2x8xf32>
    %123 = vector.shape_cast %120 : vector<2x8xf32> to vector<1x2x8xf32>
    tpu.vector_store %arg8[%c0_50, %c0_51, %c0_52], %123 {strides = array<i32>} : memref<1x2x8xf32, #tpu.memory_space<vmem>>, vector<1x2x8xf32>,
    return
  }
  func.func @transform_0(%arg0: i32) -> (i32, i32, i32) {
    %c0_i32 = arith.constant 0 : i32
    %c0_i32_0 = arith.constant 0 : i32
    %c0_i32_1 = arith.constant 0 : i32
    return %arg0, %c0_i32, %c0_i32_0 : i32, i32, i32
  }
  func.func @transform_1(%arg0: i32) -> (i32, i32) {
    %c0_i32 = arith.constant 0 : i32
    %c0_i32_0 = arith.constant 0 : i32
    %c0_i32_1 = arith.constant 0 : i32
    return %c0_i32, %c0_i32_0 : i32, i32
  }
  func.func @transform_2(%arg0: i32) -> (i32, i32) {
    %c0_i32 = arith.constant 0 : i32
    %c0_i32_0 = arith.constant 0 : i32
    %c0_i32_1 = arith.constant 0 : i32
    return %c0_i32, %c0_i32_0 : i32, i32
  }
  func.func @transform_3(%arg0: i32) -> (i32, i32) {
    %c0_i32 = arith.constant 0 : i32
    %c0_i32_0 = arith.constant 0 : i32
    %c0_i32_1 = arith.constant 0 : i32
    return %c0_i32, %c0_i32_0 : i32, i32
  }
  func.func @transform_4(%arg0: i32) -> (i32, i32) {
    %c0_i32 = arith.constant 0 : i32
    %c0_i32_0 = arith.constant 0 : i32
    %c0_i32_1 = arith.constant 0 : i32
    return %c0_i32, %c0_i32_0 : i32, i32
  }
  func.func @transform_5(%arg0: i32) -> (i32, i32) {
    %c0_i32 = arith.constant 0 : i32
    %c0_i32_0 = arith.constant 0 : i32
    %c0_i32_1 = arith.constant 0 : i32
    return %c0_i32, %c0_i32_0 : i32, i32
  }
  func.func @transform_6(%arg0: i32) -> (i32, i32) {
    %c0_i32 = arith.constant 0 : i32
    %c0_i32_0 = arith.constant 0 : i32
    %c0_i32_1 = arith.constant 0 : i32
    return %c0_i32, %c0_i32_0 : i32, i32
  }
  func.func @transform_7(%arg0: i32) -> (i32, i32, i32) {
    %c0_i32 = arith.constant 0 : i32
    %c0_i32_0 = arith.constant 0 : i32
    %c0_i32_1 = arith.constant 0 : i32
    return %arg0, %c0_i32, %c0_i32_0 : i32, i32, i32
  }
}

</mosaic_0001>

<bundles_post_ra>
// kernel: tpu_custom_call.1
= control target key start
LH: loop header
LB: loop body
LE: loop exit
PB: predicated region body
PF: predicated region fallthrough
CT: control target
= control target key end

     0   :  { %12 = vsyncpa [#allocation3], 0  ;;  %s3830_s0 = inlined_call_operand.vmem [shape: bf16[8,4,768], index: 0, kind: input, shape index: {}]   ;;  %s3831_s1 = inlined_call_operand.vmem [shape: bf16[768,32], index: 1, kind: input, shape index: {}]   ;;  %s3832_s2 = inlined_call_operand.hbm [shape: bf16[64,128], index: 2, kind: input, shape index: {}]   ;;  %s3833_s3 = inlined_call_operand.vmem [shape: bf16[128,256], index: 3, kind: input, shape index: {}]   ;;  %s3834_s4 = inlined_call_operand.vmem [shape: bf16[256,512], index: 4, kind: input, shape index: {}]   ;;  %s3835_s5 = inlined_call_operand.vmem [shape: bf16[512,8], index: 5, kind: input, shape index: {}]   ;;  %s3836_s6 = inlined_call_operand.vmem [shape: f32[1,2944], index: 6, kind: input, shape index: {}]   ;;  %s3837_s7 = inlined_call_operand.hbm [shape: f32[8,2,8], index: 7, kind: output, shape index: {}]  }
   0x1   :  { %13 = vsyncpa [#allocation4], 0 }
   0x2   :  { %15 = vsyncpa [#allocation4 + $0x1], 0  ;;  %s3110_s24 = smov 0   ;;  %s3112_s25 = smov 0  }
   0x3   :  { %s3114_s26 = smov 0   ;;  %s3116_s27 = smov 0  }
   0x4 LB: > { %s3131_s28 = sadd.s32 4294967295, %s3058_s27   ;;  %s2380_s29 = sadd.s32 4294967294, %s3058_s27   ;;  %s3058_s27 = sphi %s3116_s27, %s3845_s27   ;;  %s3054_s26 = sphi %s3114_s26, %s3844_s26   ;;  %s3050_s25 = sphi %s3112_s25, %s3843_s25   ;;  %s3046_s24 = sphi %s3110_s24, %s3842_s24  }
   0x5   : > { %s3135_s30 = sadd.s32 1, %s3058_s27   ;;  %s180_s8 = sadd.s32 1, %s3054_s26 }
   0x6   : > { %s177_s9 = ssub.s32 %s3058_s27, %s3135_s30  ;;  %p190_p0 = scmp.ne.s32.totalorder %s3054_s26, %s3050_s25 }
   0x7   : > { %p178_p1 = scmp.eq.s32.totalorder %s177_s9, 0  ;;  %p191_p2 = scmp.eq.s32.totalorder %s3131_s28, 7 }
   0x8   : > { %p196_p3 = scmp.ne.s32.totalorder %s3050_s25, %s3046_s24  ;;  %p197_p4 = scmp.eq.s32.totalorder %s2380_s29, 7 }
   0x9   : > { %s3146_s10 = scalar_select %p178_p1, %s3054_s26, %s180_s8  }
   0xa   : > { %p3148_p5 = por %p191_p2, %p190_p0  ;;  %p3152_p6 = por %p197_p4, %p196_p3 }
   0xb   : > { %p2381_p7 = scmp.ge.s32.totalorder %s3058_s27, 1  ;;  %p204_p8 = scmp.lt.s32.totalorder %s3058_s27, 9 }
   0xc   : > { %s3839_s12 = scalar_select %p3152_p6, 1, 0 }
   0xd   : > { %p2703_p9 = scmp.eq.s32.totalorder %s3131_s28, 0  ;;  %p3159_p10 = pnand %p2381_p7, %p204_p8 }
   0xe   : > { %s3060_s14 = smov [#allocation2]  }
   0xf   : > { %s219_s15 = sshll.u32 %s3060_s14, 4  ;;  %p2695_p11 = pneg %p3159_p10  ;;  %s220_s15 = int_to_ptr.vmem [resolvable:$true] %s219_s15 }
  0x10   : > { %s2979_s16 = scalar_lea.vmem %s220_s15, 512  ;;  %p2987_p3 = scmp.lt.s32.totalorder %s220_s15, %s220_s15 }
  0x11   : > { %p2696_p12 = pnand %p2703_p9, %p2695_p11  ;;  %p2980_p0 = scmp.ne.s32.totalorder %s220_s15, %s2979_s16 }
  0x12   : > { %p2988_p4 = scmp.lt.s32.totalorder %s2979_s16, %s2979_s16 }
  0x13   : > { %p2970_p13 = pneg %p2696_p12 }
  0x14   : > { %p2989_p6 = por %p2988_p4, %p2987_p3 }
  0x15   : > { %p2982_p1 = pnand %p2980_p0, %p2970_p13 }
  0x17   : > { %p2983_p2 = pneg %p2982_p1 }
  0x19   : > { %p2990_p7 = pnand %p2989_p6, %p2983_p2 }
  0x1b   : > { %2993 = shalt.err (!%p2990_p7)
}
  0x1c   : > { %s3061_s17 = smov 64   ;;  %s3062_s18 = smov 4  }
  0x1d   : > { %2698 = dma.hbm_to_vmem [thread:$0]  (!%p2696_p12), %s3832_s2, 512, %s220_s15, [#allocation3], %s3061_s17, %s3061_s17, %s3062_s18  }
  0x1e   : > { %255 = sbr.rel (%p3159_p10) target bundleno = 1427 (0x593), region = 48 }
  0x23   : > { %3037 = dma.done.wait (%p2703_p9), [#allocation3], 512  }
  0x24   : > { %3039 = vsyncadd (%p2703_p9), [#allocation3], 4294966784  ;;  %v2747_v0 = vld [vmem:[%s3831_s1 + $0x78] sm:$0xff]   ;;  %v2751_v4 = vld [vmem:[%s3831_s1 + $0x70] sm:$0xff]   ;;  %p287_p6 = scmp.lt.s32.totalorder %s3131_s28, 7  ;;  %v566_v20 = vlaneseq  ;;  %v3064_v63 = vmov 0.0  }
  0x25   : > { %v2748_v1 = vld [vmem:[%s3831_s1 + $0x38] sm:$0xff]   ;;  %2561 = vmatprep.subr.bf16.mxu0 %v2747_v0  ;;  %v2752_v5 = vld [vmem:[%s3831_s1 + $0x30] sm:$0xff]   ;;  %v2755_v8 = vld [vmem:[%s3831_s1 + $0x68] sm:$0xff]   ;;  %v3063_v22 = vmov 1983009808   ;;  %vm3065_vm0 = vmmov 0  }
  0x26   : > { %v2749_v2 = vld [vmem:[%s3831_s1 + $0xf8] sm:$0xff]   ;;  %2562 = vmatpush3.bf16.msra.mxu0 %v2748_v1  ;;  %v2753_v6 = vld [vmem:[%s3831_s1 + $0xf0] sm:$0xff]   ;;  %v2756_v9 = vld [vmem:[%s3831_s1 + $0x28] sm:$0xff]   ;;  %s288_s21 = scalar_select %p287_p6, %s3131_s28, 7  ;;  %v564_v23 = vunpack.c.l.s4 %v3063_v22  ;;  %v3250_v27 = vshrl.u32 %v566_v20, 7  ;;  %vm1006_vm1 = vcmask 261120  }
  0x27   : > { %v2750_v3 = vld [vmem:[%s3831_s1 + $0xb8] sm:$0xff]   ;;  %2583 = vmatprep.subr.bf16.mxu1 %v2749_v2  ;;  %2563 = vmatprep.subr.bf16.mxu0 %v2751_v4  ;;  %v2754_v7 = vld [vmem:[%s3831_s1 + $0xb0] sm:$0xff]   ;;  %v2757_v10 = vld [vmem:[%s3831_s1 + $0xe8] sm:$0xff]   ;;  %s3066_s14 = smov 32   ;;  %vm1039_vm2 = vcmask 523264   ;;  %vm1083_vm3 = vcmask 1041408  }
  0x28   : > { %2584 = vmatpush3.bf16.msra.mxu1 %v2750_v3  ;;  %v2758_v11 = vld [vmem:[%s3831_s1 + $0xa8] sm:$0xff]   ;;  %v2759_v12 = vld [vmem:[%s3831_s1 + $0x60] sm:$0xff]   ;;  %v2763_v16 = vld [vmem:[%s3831_s1 + $0x58] sm:$0xff]   ;;  %s2688_s16 = smul.u32 12, %s288_s21  ;;  %v565_v29 = vunpack.c.0.s8 %v564_v23  ;;  %s2558_s23 = sshll.u32 %s3131_s28, 5  ;;  %vm2293_vm11 = vcmask 58368  }
  0x29   : > { %2585 = vmatprep.subr.bf16.mxu1 %v2753_v6  ;;  %v2760_v13 = vld [vmem:[%s3831_s1 + $0x20] sm:$0xff]   ;;  %v2764_v17 = vld [vmem:[%s3831_s1 + $0x18] sm:$0xff]   ;;  %v2767_v21 = vld [vmem:[%s3831_s1 + $0x50] sm:$0xff]   ;;  %s3069_s18 = smov [#allocation5]  }
  0x2a   : > { %2564 = vmatpush3.bf16.msra.mxu0 %v2752_v5  ;;  %v2761_v14 = vld [vmem:[%s3831_s1 + $0xe0] sm:$0xff]   ;;  %v2765_v18 = vld [vmem:[%s3831_s1 + $0xd8] sm:$0xff]   ;;  %v2768_v24 = vld [vmem:[%s3831_s1 + $0x10] sm:$0xff]   ;;  %s3270_s13 = scalar_lea.vmem %s3830_s0, %s2688_s16  ;;  %v568_v34 = vsub.s32 %v565_v29, %v3250_v27  ;;  %s2998_s19 = sshll.u32 %s3069_s18, 4  ;;  %s2999_s19 = int_to_ptr.vmem [resolvable:$false] %s2998_s19 }
  0x2b   : > { %2565 = vmatprep.subr.bf16.mxu0 %v2755_v8  ;;  %v2762_v15 = vld [vmem:[%s3831_s1 + $0xa0] sm:$0xff]   ;;  %v2766_v19 = vld [vmem:[%s3831_s1 + $0x98] sm:$0xff]   ;;  %v2769_v25 = vld [vmem:[%s3831_s1 + $0xd0] sm:$0xff]   ;;  %s3000_s28 = scalar_lea.vmem %s2999_s19, 64 }
  0x2c   : > { %2586 = vmatpush3.bf16.msra.mxu1 %v2754_v7  ;;  %v2770_v26 = vld [vmem:[%s3831_s1 + $0x90] sm:$0xff]   ;;  %v2771_v28 = vld [vmem:[%s3831_s1 + $0x48] sm:$0xff]   ;;  %v2775_v33 = vld [vmem:[%s3831_s1 + $0x40] sm:$0xff]  }
  0x2d   : > { %2587 = vmatprep.subr.bf16.mxu1 %v2757_v10  ;;  %v2772_v30 = vld [vmem:[%s3831_s1 + $0x8] sm:$0xff]   ;;  %v2776_v35 = vld [vmem:[%s3831_s1] sm:$0xff]   ;;  %v2779_v41 = vld [vmem:[%s3831_s1 + $0x178] sm:$0xff]  }
  0x2e   : > { %2566 = vmatpush3.bf16.msra.mxu0 %v2756_v9  ;;  %v2773_v31 = vld [vmem:[%s3831_s1 + $0xc8] sm:$0xff]   ;;  %v2777_v36 = vld [vmem:[%s3831_s1 + $0xc0] sm:$0xff]   ;;  %v2781_v44 = vld [vmem:[%s3831_s1 + $0x138] sm:$0xff]  }
  0x2f   : > { %2567 = vmatprep.subr.bf16.mxu0 %v2759_v12  ;;  %v2774_v32 = vld [vmem:[%s3831_s1 + $0x88] sm:$0xff]   ;;  %v304_v37 = vld [vmem:[%s3270_s13] sm:$0xff]  ;;  %v2782_v45 = vld [vmem:[%s3831_s1 + $0x170] sm:$0xff]  }
  0x30   : > { %2588 = vmatpush3.bf16.msra.mxu1 %v2758_v11  ;;  %v569_v38 = vrot.slane %v304_v37, %v568_v34  ;;  %v2778_v39 = vld [vmem:[%s3831_s1 + $0x80] sm:$0xff]   ;;  %v562_v40 = vcombine.high %v304_v37, %v304_v37  ;;  %v2783_v47 = vld [vmem:[%s3831_s1 + $0x130] sm:$0xff]   ;;  %v2784_v48 = vld [vmem:[%s3831_s1 + $0x168] sm:$0xff]  }
  0x31   : > { %2589 = vmatprep.subr.bf16.mxu1 %v2761_v14  ;;  %v2785_v49 = vld [vmem:[%s3831_s1 + $0x128] sm:$0xff]   ;;  %v2786_v50 = vld [vmem:[%s3831_s1 + $0x160] sm:$0xff]   ;;  %v2788_v52 = vld [vmem:[%s3831_s1 + $0x158] sm:$0xff]  }
  0x32   : > { %2568 = vmatpush3.bf16.msra.mxu0 %v2760_v13  ;;  %v577_v42 = vcombine.high %v569_v38, %v569_v38  ;;  %v576_v43 = vrot.slane %v562_v40, %v568_v34  ;;  %v2787_v51 = vld [vmem:[%s3831_s1 + $0x120] sm:$0xff]   ;;  %v2789_v53 = vld [vmem:[%s3831_s1 + $0x118] sm:$0xff]   ;;  %v2389_v54 = vld.sshfl [vmem:[%s3270_s13 + $0x8] sm:$0x33 pattern:$0x76325410] }
  0x33   : > { %2569 = vmatprep.subr.bf16.mxu0 %v2763_v16  ;;  %v2790_v55 = vld [vmem:[%s3831_s1 + $0x150] sm:$0xff]   ;;  %v586_v56 = vcombine.high %v2389_v54, %v2389_v54  ;;  %v2792_v58 = vld [vmem:[%s3831_s1 + $0x148] sm:$0xff]   ;;  %v2794_v60 = vld [vmem:[%s3831_s1 + $0x140] sm:$0xff]   ;;  %s284_s13 = sand.u32 1, %s3050_s25  }
  0x34   : > { %2590 = vmatpush3.bf16.msra.mxu1 %v2762_v15  ;;  %913 = vmatprep.mubr.bf16.mxu0 %v577_v42  ;;  %v578_v46 = vcombine.high %v576_v43, %v576_v43  ;;  %v2791_v57 = vld [vmem:[%s3831_s1 + $0x110] sm:$0xff]   ;;  %v2793_v59 = vld [vmem:[%s3831_s1 + $0x108] sm:$0xff]   ;;  %v2795_v61 = vld [vmem:[%s3831_s1 + $0x100] sm:$0xff]   ;;  %s2386_s22 = sshll.u32 %s284_s13, 1  ;;  %s2296_s15 = scalar_lea.sflag [#allocation4], %s284_s13 }
  0x35   : > { %2591 = vmatprep.subr.bf16.mxu1 %v2765_v18  ;;  %v2796_v62 = vld [vmem:[#allocation2 + $0x18] sm:$0xff]   ;;  %v2797_v0 = vld [vmem:[#allocation2 + $0x10] sm:$0xff]   ;;  %v2798_v1 = vld [vmem:[#allocation2 + $0x8] sm:$0xff]   ;;  %s286_s29 = scalar_lea.vmem [#allocation5], %s2386_s22 }
  0x36   : > { %2570 = vmatpush3.bf16.msra.mxu0 %v2764_v17  ;;  %953 = vmatprep.mubr.bf16.mxu1 %v578_v46  ;;  %v2799_v10 = vld [vmem:[#allocation2] sm:$0xff]   ;;  %v2818_v40 = vld [vmem:[%s3833_s3 + $0x10] ss:$8 sps:$4 sm:$0xff]   ;;  %s2309_s8 = sshll.u32 %s286_s29, 4  ;;  %s2310_s8 = int_to_ptr.vmem [resolvable:$true] %s2309_s8 }
  0x37   : > { %2571 = vmatprep.subr.bf16.mxu0 %v2767_v21  ;;  %v2388_v12 = vld [vmem:[%s3836_s6] ss:$0 sm:$0xff]  ;;  %v2805_v29 = vld [vmem:[%s3833_s3 + $0x64] ss:$8 sps:$4 sm:$0xff]   ;;  %s2994_s17 = scalar_lea.vmem %s2310_s8, 32  ;;  %p3001_p11 = scmp.lt.s32.totalorder %s2310_s8, %s2999_s19 }
  0x38   : > { %2592 = vmatpush3.bf16.msra.mxu1 %v2766_v19  ;;  %v2809_v34 = vld [vmem:[%s3833_s3 + $0x40] ss:$8 sps:$4 sm:$0xff]   ;;  %v2817_v37 = vld [vmem:[%s3833_s3 + $0x24] ss:$8 sps:$4 sm:$0xff]   ;;  %p2995_p8 = scmp.ne.s32.totalorder %s2310_s8, %s2994_s17  ;;  %p3002_p12 = scmp.lt.s32.totalorder %s3000_s28, %s2994_s17 }
  0x39   : > { %2593 = vmatprep.subr.bf16.mxu1 %v2769_v25  ;;  %v2821_v42 = vld [vmem:[%s3833_s3] ss:$8 sps:$4 sm:$0xff]  }
  0x3a   : > { %2572 = vmatpush3.bf16.msra.mxu0 %v2768_v24  ;;  %p2996_p9 = pnand %p2995_p8, %p3148_p5  ;;  %p3003_p13 = por %p3002_p12, %p3001_p11 }
  0x3b   : > { %2573 = vmatprep.subr.bf16.mxu0 %v2771_v28  ;;  %v2800_v28 = vld [vmem:[%s3833_s3 + $0x70] ss:$8 sps:$4 sm:$0xff]  }
  0x3c   : > { %2594 = vmatpush3.bf16.msra.mxu1 %v2770_v26  ;;  %v2802_v26 = vld [vmem:[%s3833_s3 + $0x74] ss:$8 sps:$4 sm:$0xff]   ;;  %p2997_p10 = pneg %p2996_p9 }
  0x3d   : > { %2595 = vmatprep.subr.bf16.mxu1 %v2773_v31  ;;  %v2808_v31 = vld [vmem:[%s3833_s3 + $0x54] ss:$8 sps:$4 sm:$0xff]  }
  0x3e   : > { %2574 = vmatpush3.bf16.msra.mxu0 %v2772_v30  ;;  %v2803_v30 = vld [vmem:[%s3833_s3 + $0x60] ss:$8 sps:$4 sm:$0xff]   ;;  %p3004_p0 = pnand %p3003_p13, %p2997_p10 }
  0x3f   : > { %2575 = vmatprep.subr.bf16.mxu0 %v2775_v33  ;;  %v2811_v33 = vld [vmem:[%s3833_s3 + $0x44] ss:$8 sps:$4 sm:$0xff]  }
  0x40   : > { %2596 = vmatpush3.bf16.msra.mxu1 %v2774_v32  ;;  %v2806_v32 = vld [vmem:[%s3833_s3 + $0x50] ss:$8 sps:$4 sm:$0xff]  }
  0x41   : > { %2597 = vmatprep.subr.bf16.mxu1 %v2777_v36  ;;  %v2812_v36 = vld [vmem:[%s3833_s3 + $0x30] ss:$8 sps:$4 sm:$0xff]  }
  0x42   : > { %2576 = vmatpush3.bf16.msra.mxu0 %v2776_v35  ;;  %v2814_v35 = vld [vmem:[%s3833_s3 + $0x34] ss:$8 sps:$4 sm:$0xff]  }
  0x43   : > { %2605 = vmatprep.subr.bf16.mxu0 %v2779_v41  ;;  %v2823_v41 = vld [vmem:[%s3833_s3 + $0x4] ss:$8 sps:$4 sm:$0xff]  }
  0x44   : > { %2598 = vmatpush3.bf16.msra.mxu1 %v2778_v39  ;;  %v2820_v39 = vld [vmem:[%s3833_s3 + $0x14] ss:$8 sps:$4 sm:$0xff]  }
  0x45   : > { %914 = vmatmul.mubr.bf16.vlgmr.msra.gmra.mxu0 %v569_v38  ;;  %2676 = vmatprep.subr.bf16.mxu1 %v3064_v63  ;;  %v2815_v38 = vld [vmem:[%s3833_s3 + $0x20] ss:$8 sps:$4 sm:$0xff]  }
  0x46   : > { %2606 = vmatpush3.bf16.msra.mxu0 %v2781_v44  ;;  %993 = vmatprep.mubr.bf16.mxu0 %v586_v56  ;;  %v2438_v44 = vld [vmem:[%s3836_s6 + $0x1] ss:$0 sm:$0xff] }
  0x47   : > { %954 = vmatmul.mubr.bf16.vlgmr.msra.gmra.mxu1 %v576_v43  ;;  %2607 = vmatprep.subr.bf16.mxu0 %v2782_v45  ;;  %v3067_v43 = vmov 0  }
  0x48   : > { %2677 = vmatpush3.bf16.msra.mxu1 %v2796_v62  ;;  %2684 = vmatprep.mubr.msk.bf16.mxu1 %vm3065_vm0, %v3064_v63 }
  0x49   : > { %2678 = vmatprep.subr.bf16.mxu1 %v3064_v63 }
  0x4a   : > { %2608 = vmatpush3.bf16.msra.mxu0 %v2783_v47 }
  0x4b   : > { %2609 = vmatprep.subr.bf16.mxu0 %v2784_v48 }
  0x4c   : > { %2679 = vmatpush3.bf16.msra.mxu1 %v2797_v0 }
  0x4d   : > { %2680 = vmatprep.subr.bf16.mxu1 %v3064_v63 }
  0x4e   : > { %2610 = vmatpush3.bf16.msra.mxu0 %v2785_v49 }
  0x4f   : > { %2611 = vmatprep.subr.bf16.mxu0 %v2786_v50 }
  0x50   : > { %2681 = vmatpush3.bf16.msra.mxu1 %v2798_v1 }
  0x51   : > { %2682 = vmatprep.subr.bf16.mxu1 %v3064_v63 }
  0x52   : > { %2612 = vmatpush3.bf16.msra.mxu0 %v2787_v51 }
  0x53   : > { %2613 = vmatprep.subr.bf16.mxu0 %v2788_v52 }
  0x54   : > { %2683 = vmatpush3.bf16.msra.mxu1 %v2799_v10  ;;  %v296_v10 = vld [vmem:[%s3836_s6 + $0x3] sm:$0x1] }
  0x55   : > { %1218 = vmatprep.subr.bf16.mxu1 %v2802_v26  ;;  %v2830_v26 = vld [vmem:[%s3834_s4 + $0xc0] ss:$16 sps:$4 sm:$0xff]  }
  0x56   : > { %2614 = vmatpush3.bf16.msra.mxu0 %v2789_v53 }
  0x57   : > { %2615 = vmatprep.subr.bf16.mxu0 %v2790_v55 }
  0x5a   : > { %2616 = vmatpush3.bf16.msra.mxu0 %v2791_v57 }
  0x5b   : > { %2617 = vmatprep.subr.bf16.mxu0 %v2792_v58 }
  0x5e   : > { %2618 = vmatpush3.bf16.msra.mxu0 %v2793_v59 }
  0x5f   : > { %2619 = vmatprep.subr.bf16.mxu0 %v2794_v60 }
  0x62   : > { %2620 = vmatpush3.bf16.msra.mxu0 %v2795_v61 }
  0x65   : > { %994 = vmatmul.mubr.bf16.vlgmr.msra.gmra.mxu0 %v2389_v54 }
 0x105   : > { %v2577_v2 = vpop.f32.mrf.mxu0 }
 0x107   : > { %v2578_v3 = vpop.f32.mrf.mxu0  ;;  %v2599_v4 = vpop.f32.mrf.mxu1 }
 0x108   : > { %v2579_v11 = vadd.f32 %v2578_v3, %v2577_v2 }
 0x109   : > { %v2580_v5 = vpop.f32.mrf.mxu0  ;;  %v2600_v6 = vpop.f32.mrf.mxu1 }
 0x10a   : > { %v916_v13 = vadd.f32 %v2579_v11, %v2388_v12  ;;  %v2601_v14 = vadd.f32 %v2600_v6, %v2599_v4  ;;  %v295_v6 = vld [vmem:[%s3836_s6 + $0x2] sm:$0x1] }
 0x10b   : > { %v2581_v7 = vpop.f32.mrf.mxu0  ;;  %v2602_v8 = vpop.f32.mrf.mxu1 }
 0x10c   : > { %v956_v17 = vadd.f32 %v2601_v14, %v916_v13  ;;  %v3392_v7 = vsub.s32 0, %v3250_v27 }
 0x10d   : > { %v2603_v9 = vpop.f32.mrf.mxu1 }
 0x125   : > { %v2621_v15 = vpop.f32.mrf.mxu0 }
 0x127   : > { %v2622_v16 = vpop.f32.mrf.mxu0 }
 0x128   : > { %v2623_v18 = vadd.f32 %v2622_v16, %v2621_v15 }
 0x129   : > { %v2624_v19 = vpop.f32.mrf.mxu0 }
 0x12a   : > { %v996_v20 = vadd.f32 %v2623_v18, %v956_v17 }
 0x12b   : > { %v2625_v21 = vpop.f32.mrf.mxu0 }
 0x12c   : > { %v1002_v22 = vrot.slane %v996_v20, 2  ;;  %v2829_v21 = vld [vmem:[%s3834_s4 + $0xec] ss:$16 sps:$4 sm:$0xff]  }
 0x12e   : > { %1003 = vrot.lane.b32.xlu0 %v1002_v22, %s3066_s14  ;;  %v2824_v22 = vld [vmem:[%s3834_s4 + $0xe0] ss:$16 sps:$4 sm:$0xff]   ;;  %s2307_s14 = scalar_lea.hbm %s3837_s7, %s2558_s23 }
 0x1a0   : > { %v1004_v23 = vpop.permute.xlu0 %1003 }
 0x1a1   : > { %v1007_v24 = vsel %vm1006_vm1, %v996_v20, %v1004_v23  ;;  %v2826_v20 = vld [vmem:[%s3834_s4 + $0xe4] ss:$16 sps:$4 sm:$0xff]   ;;  %v2827_v23 = vld [vmem:[%s3834_s4 + $0xe8] ss:$16 sps:$4 sm:$0xff]  }
 0x1a2   : > { %v1008_v25 = vpack.c.bf16 %v1007_v24, %v1007_v24  ;;  %1716 = vmatprep.subr.bf16.mxu0 %v2826_v20  ;;  %v2832_v24 = vld [vmem:[%s3834_s4 + $0xc4] ss:$16 sps:$4 sm:$0xff]   ;;  %v2919_v20 = vld [vmem:[%s3834_s4 + $0x10c] ss:$16 sps:$4 sm:$0xff]  }
 0x1a3   : > { %1717 = vmatpush1.bf16.msra.mxu0 %v2824_v22  ;;  %v297_v22 = vld [vmem:[%s3836_s6 + $0x4] sm:$0x3] }
 0x1a4   : > { %2685 = vmatmul.mubr.msk.bf16.vlgmr.msra.gmra.mxu1 %vm1039_vm2, %v1008_v25  ;;  %v2835_v25 = vld [vmem:[%s3834_s4 + $0xcc] ss:$16 sps:$4 sm:$0xff]   ;;  %1718 = vmatprep.subr.bf16.mxu0 %v2832_v24  ;;  %v1131_v24 = vrot.slane %v297_v22, %v3392_v7 }
 0x1a5   : > { %1219 = vmatpush1.bf16.msra.mxu1 %v2800_v28  ;;  %1250 = vmatprep.mubr.bf16.mxu1 %v3067_v43  ;;  %v2833_v28 = vld [vmem:[%s3834_s4 + $0xc8] ss:$16 sps:$4 sm:$0xff]  }
 0x1a6   : > { %1220 = vmatprep.subr.bf16.mxu1 %v2805_v29  ;;  %v2838_v29 = vld [vmem:[%s3834_s4 + $0xa4] ss:$16 sps:$4 sm:$0xff]   ;;  %v2857_v43 = vld [vmem:[%s3834_s4 + $0x48] ss:$16 sps:$4 sm:$0xff]  }
 0x1a7   : > { %1719 = vmatpush1.bf16.msra.mxu0 %v2830_v26 }
 0x1a8   : > { %1720 = vmatprep.subr.bf16.mxu0 %v2838_v29 }
 0x1a9   : > { %1221 = vmatpush1.bf16.msra.mxu1 %v2803_v30  ;;  %v2841_v30 = vld [vmem:[%s3834_s4 + $0xac] ss:$16 sps:$4 sm:$0xff]  }
 0x1aa   : > { %1222 = vmatprep.subr.bf16.mxu1 %v2808_v31  ;;  %v2836_v31 = vld [vmem:[%s3834_s4 + $0xa0] ss:$16 sps:$4 sm:$0xff]  }
 0x1ab   : > { %1721 = vmatpush1.bf16.msra.mxu0 %v2836_v31 }
 0x1ad   : > { %1223 = vmatpush1.bf16.msra.mxu1 %v2806_v32  ;;  %v2839_v32 = vld [vmem:[%s3834_s4 + $0xa8] ss:$16 sps:$4 sm:$0xff]  }
 0x1ae   : > { %1224 = vmatprep.subr.bf16.mxu1 %v2811_v33  ;;  %v2844_v33 = vld [vmem:[%s3834_s4 + $0x84] ss:$16 sps:$4 sm:$0xff]  }
 0x1af   : > { %1722 = vmatprep.subr.bf16.mxu0 %v2844_v33 }
 0x1b1   : > { %1225 = vmatpush1.bf16.msra.mxu1 %v2809_v34  ;;  %v2847_v34 = vld [vmem:[%s3834_s4 + $0x8c] ss:$16 sps:$4 sm:$0xff]  }
 0x1b2   : > { %1226 = vmatprep.subr.bf16.mxu1 %v2814_v35  ;;  %v2842_v35 = vld [vmem:[%s3834_s4 + $0x80] ss:$16 sps:$4 sm:$0xff]  }
 0x1b3   : > { %1723 = vmatpush1.bf16.msra.mxu0 %v2842_v35 }
 0x1b5   : > { %1227 = vmatpush1.bf16.msra.mxu1 %v2812_v36  ;;  %v2845_v36 = vld [vmem:[%s3834_s4 + $0x88] ss:$16 sps:$4 sm:$0xff]  }
 0x1b6   : > { %1228 = vmatprep.subr.bf16.mxu1 %v2817_v37  ;;  %v2850_v37 = vld [vmem:[%s3834_s4 + $0x64] ss:$16 sps:$4 sm:$0xff]  }
 0x1b7   : > { %1724 = vmatprep.subr.bf16.mxu0 %v2850_v37 }
 0x1b9   : > { %1229 = vmatpush1.bf16.msra.mxu1 %v2815_v38  ;;  %v2853_v38 = vld [vmem:[%s3834_s4 + $0x6c] ss:$16 sps:$4 sm:$0xff]  }
 0x1ba   : > { %1230 = vmatprep.subr.bf16.mxu1 %v2820_v39  ;;  %v2848_v39 = vld [vmem:[%s3834_s4 + $0x60] ss:$16 sps:$4 sm:$0xff]  }
 0x1bb   : > { %1725 = vmatpush1.bf16.msra.mxu0 %v2848_v39 }
 0x1bd   : > { %1231 = vmatpush1.bf16.msra.mxu1 %v2818_v40  ;;  %v2851_v40 = vld [vmem:[%s3834_s4 + $0x68] ss:$16 sps:$4 sm:$0xff]  }
 0x1be   : > { %1232 = vmatprep.subr.bf16.mxu1 %v2823_v41  ;;  %v2856_v41 = vld [vmem:[%s3834_s4 + $0x44] ss:$16 sps:$4 sm:$0xff]  }
 0x1bf   : > { %1726 = vmatprep.subr.bf16.mxu0 %v2856_v41 }
 0x1c1   : > { %1233 = vmatpush1.bf16.msra.mxu1 %v2821_v42  ;;  %v2854_v42 = vld [vmem:[%s3834_s4 + $0x40] ss:$16 sps:$4 sm:$0xff]  }
 0x1c2   : > { %1757 = vmatprep.subr.bf16.mxu1 %v2829_v21  ;;  %1727 = vmatpush1.bf16.msra.mxu0 %v2854_v42  ;;  %v2917_v21 = vld [vmem:[%s3834_s4 + $0x108] ss:$16 sps:$4 sm:$0xff]  }
 0x264   : > { %v1077_v45 = vpop.f32.mrf.mxu1 }
 0x265   : > { %v1078_v46 = vadd.f32 %v2438_v44, %v1077_v45  ;;  %v2859_v44 = vld [vmem:[%s3834_s4 + $0x4c] ss:$16 sps:$4 sm:$0xff]   ;;  %v2862_v45 = vld [vmem:[%s3834_s4 + $0x24] ss:$16 sps:$4 sm:$0xff]  }
 0x266   : > { %v2686_v47 = vpop.f32.mrf.mxu1  ;;  %1728 = vmatprep.subr.bf16.mxu0 %v2862_v45 }
 0x267   : > { %v1084_v48 = vsel %vm1083_vm3, %v1078_v46, 0.0  ;;  %v1093_v49 = vmul.f32 %v1078_v46, %v1078_v46  ;;  %v2860_v47 = vld [vmem:[%s3834_s4 + $0x20] ss:$16 sps:$4 sm:$0xff]  }
 0x268   : > { %v1085_v50 = vrot.slane %v1084_v48, 4  ;;  %v1080_v51 = vpop.f32.mrf.mxu1  ;;  %1729 = vmatpush1.bf16.msra.mxu0 %v2860_v47 }
 0x269   : > { %v1094_v52 = vsel %vm1083_vm3, %v1093_v49, 0.0  ;;  %v2868_v49 = vld [vmem:[%s3834_s4 + $0x4] ss:$16 sps:$4 sm:$0xff]   ;;  %v2866_v51 = vld [vmem:[%s3834_s4] ss:$16 sps:$4 sm:$0xff]  }
 0x26a   : > { %v1086_v53 = vadd.f32 %v1085_v50, %v1084_v48  ;;  %v1095_v54 = vrot.slane %v1094_v52, 4  ;;  %v2687_v55 = vpop.f32.mrf.mxu1  ;;  %v2863_v48 = vld [vmem:[%s3834_s4 + $0x28] ss:$16 sps:$4 sm:$0xff]   ;;  %v2871_v50 = vld [vmem:[%s3834_s4 + $0xc] ss:$16 sps:$4 sm:$0xff]   ;;  %1730 = vmatprep.subr.bf16.mxu0 %v2868_v49 }
 0x26b   : > { %v2872_v55 = vld [vmem:[%s3834_s4 + $0x1e0] ss:$16 sps:$4 sm:$0xff]  }
 0x26c   : > { %v1087_v56 = vrot.slane %v1086_v53, 2  ;;  %v1096_v57 = vadd.f32 %v1095_v54, %v1094_v52  ;;  %v2869_v52 = vld [vmem:[%s3834_s4 + $0x8] ss:$16 sps:$4 sm:$0xff]   ;;  %1731 = vmatpush1.bf16.msra.mxu0 %v2866_v51  ;;  %v2877_v54 = vld [vmem:[%s3834_s4 + $0x1ec] ss:$16 sps:$4 sm:$0xff]  }
 0x26e   : > { %v1088_v58 = vadd.f32 %v1087_v56, %v1086_v53  ;;  %v1097_v59 = vrot.slane %v1096_v57, 2  ;;  %v2874_v53 = vld [vmem:[%s3834_s4 + $0x1e4] ss:$16 sps:$4 sm:$0xff]   ;;  %v2875_v56 = vld [vmem:[%s3834_s4 + $0x1e8] ss:$16 sps:$4 sm:$0xff]  }
 0x26f   : > { %1732 = vmatprep.subr.bf16.mxu0 %v2874_v53 }
 0x270   : > { %v1089_v60 = vrot.slane %v1088_v58, 1  ;;  %v1098_v61 = vadd.f32 %v1097_v59, %v1096_v57  ;;  %1733 = vmatpush2.bf16.msra.mxu0 %v2872_v55  ;;  %v2880_v57 = vld [vmem:[%s3834_s4 + $0x1c4] ss:$16 sps:$4 sm:$0xff]   ;;  %v2878_v59 = vld [vmem:[%s3834_s4 + $0x1c0] ss:$16 sps:$4 sm:$0xff]  }
 0x271   : > { %1734 = vmatprep.subr.bf16.mxu0 %v2880_v57 }
 0x272   : > { %v1090_v62 = vadd.f32 %v1089_v60, %v1088_v58  ;;  %v1099_v63 = vrot.slane %v1098_v61, 1  ;;  %v2883_v58 = vld [vmem:[%s3834_s4 + $0x1cc] ss:$16 sps:$4 sm:$0xff]   ;;  %v2881_v60 = vld [vmem:[%s3834_s4 + $0x1c8] ss:$16 sps:$4 sm:$0xff]  }
 0x274   : > { %v1092_v0 = vmul.f32 0.5, %v1090_v62  ;;  %v1100_v1 = vadd.f32 %v1099_v63, %v1098_v61  ;;  %1735 = vmatpush2.bf16.msra.mxu0 %v2878_v59  ;;  %v2886_v61 = vld [vmem:[%s3834_s4 + $0x1a4] ss:$16 sps:$4 sm:$0xff]   ;;  %v2889_v62 = vld [vmem:[%s3834_s4 + $0x1ac] ss:$16 sps:$4 sm:$0xff]  }
 0x275   : > { %v2884_v63 = vld [vmem:[%s3834_s4 + $0x1a0] ss:$16 sps:$4 sm:$0xff]   ;;  %1736 = vmatprep.subr.bf16.mxu0 %v2886_v61 }
 0x276   : > { %v1101_v2 = vmul.f32 0.5, %v1100_v1  ;;  %v1102_v3 = vmul.f32 %v1092_v0, %v1092_v0  ;;  %v2892_v1 = vld [vmem:[%s3834_s4 + $0x184] ss:$16 sps:$4 sm:$0xff]  }
 0x278   : > { %v1103_v4 = vsub.f32 %v1101_v2, %v1102_v3  ;;  %1737 = vmatpush2.bf16.msra.mxu0 %v2884_v63  ;;  %v2895_v2 = vld [vmem:[%s3834_s4 + $0x18c] ss:$16 sps:$4 sm:$0xff]   ;;  %v2890_v3 = vld [vmem:[%s3834_s4 + $0x180] ss:$16 sps:$4 sm:$0xff]  }
 0x279   : > { %1738 = vmatprep.subr.bf16.mxu0 %v2892_v1 }
 0x27a   : > { %v1104_v5 = vadd.f32 1e-05, %v1103_v4  ;;  %v2893_v4 = vld [vmem:[%s3834_s4 + $0x188] ss:$16 sps:$4 sm:$0xff]  }
 0x27c   : > { %2952 = vrsqrt.f32 %v1104_v5  ;;  %1739 = vmatpush2.bf16.msra.mxu0 %v2890_v3  ;;  %v2898_v5 = vld [vmem:[%s3834_s4 + $0x164] ss:$16 sps:$4 sm:$0xff]  }
 0x27d   : > { %1740 = vmatprep.subr.bf16.mxu0 %v2898_v5 }
 0x289   : > { %v2953_v8 = vpop.eup %2952 }
 0x28a   : > { %v1106_v9 = vmul.f32 %v2953_v8, %v295_v6  ;;  %v2901_v6 = vld [vmem:[%s3834_s4 + $0x16c] ss:$16 sps:$4 sm:$0xff]   ;;  %v2896_v8 = vld [vmem:[%s3834_s4 + $0x160] ss:$16 sps:$4 sm:$0xff]  }
 0x28b   : > { %1741 = vmatpush2.bf16.msra.mxu0 %v2896_v8 }
 0x28c   : > { %v1111_v11 = vrot.slane %v1106_v9, %v3392_v7  ;;  %v1114_v12 = vmul.f32 %v1106_v9, %v1092_v0  ;;  %v2887_v0 = vld [vmem:[%s3834_s4 + $0x1a8] ss:$16 sps:$4 sm:$0xff]  }
 0x28d   : > { %v2899_v9 = vld [vmem:[%s3834_s4 + $0x168] ss:$16 sps:$4 sm:$0xff]  }
 0x28e   : > { %v1115_v13 = vsub.f32 %v296_v10, %v1114_v12  ;;  %v1113_v14 = vmul.f32 %v1111_v11, %v1078_v46  ;;  %v2865_v46 = vld [vmem:[%s3834_s4 + $0x2c] ss:$16 sps:$4 sm:$0xff]   ;;  %v2904_v10 = vld [vmem:[%s3834_s4 + $0x144] ss:$16 sps:$4 sm:$0xff]   ;;  %v2902_v12 = vld [vmem:[%s3834_s4 + $0x140] ss:$16 sps:$4 sm:$0xff]  }
 0x28f   : > { %v2907_v11 = vld [vmem:[%s3834_s4 + $0x14c] ss:$16 sps:$4 sm:$0xff]   ;;  %1742 = vmatprep.subr.bf16.mxu0 %v2904_v10  ;;  %v3068_v10 = vmov 1966171168  }
 0x290   : > { %v1120_v15 = vrot.slane %v1115_v13, %v3392_v7  ;;  %v2905_v13 = vld [vmem:[%s3834_s4 + $0x148] ss:$16 sps:$4 sm:$0xff]   ;;  %1743 = vmatpush2.bf16.msra.mxu0 %v2902_v12 }
 0x292   : > { %v1122_v16 = vadd.f32 %v1120_v15, %v1113_v14  ;;  %v2910_v14 = vld [vmem:[%s3834_s4 + $0x124] ss:$16 sps:$4 sm:$0xff]   ;;  %v2913_v15 = vld [vmem:[%s3834_s4 + $0x12c] ss:$16 sps:$4 sm:$0xff]  }
 0x293   : > { %1744 = vmatprep.subr.bf16.mxu0 %v2910_v14 }
 0x294   : > { %v1124_v17 = vmul.f32 0.2, %v1122_v16  ;;  %vm1123_vm4 = vcmp.gt.f32.partialorder %v1122_v16, 0.0 }
 0x296   : > { %v1125_v18 = vsel %vm1123_vm4, %v1122_v16, %v1124_v17  ;;  %v2908_v16 = vld [vmem:[%s3834_s4 + $0x120] ss:$16 sps:$4 sm:$0xff]   ;;  %v2911_v17 = vld [vmem:[%s3834_s4 + $0x128] ss:$16 sps:$4 sm:$0xff]  }
 0x297   : > { %v1126_v19 = vpack.c.bf16 %v1125_v18, %v1125_v18  ;;  %v2916_v18 = vld [vmem:[%s3834_s4 + $0x104] ss:$16 sps:$4 sm:$0xff]   ;;  %1745 = vmatpush2.bf16.msra.mxu0 %v2908_v16 }
 0x298   : > { %1746 = vmatprep.subr.bf16.mxu0 %v2916_v18  ;;  %v298_v18 = vld [vmem:[%s3836_s6 + $0x6] sm:$0x3] }
 0x299   : > { %1251 = vmatmul.mubr.bf16.vlgmr.msra.gmra.mxu1 %v1126_v19  ;;  %v2914_v19 = vld [vmem:[%s3834_s4 + $0x100] ss:$16 sps:$4 sm:$0xff]  }
 0x29a   : > { %1758 = vmatpush1.bf16.msra.mxu1 %v2827_v23  ;;  %v3595_v23 = vsub.s32 1, %v3250_v27 }
 0x29b   : > { %1759 = vmatprep.subr.bf16.mxu1 %v2835_v25  ;;  %1747 = vmatpush2.bf16.msra.mxu0 %v2914_v19 }
 0x29c   : > { %v1135_v25 = vrot.slane %v297_v22, %v3595_v23 }
 0x29e   : > { %1760 = vmatpush1.bf16.msra.mxu1 %v2833_v28 }
 0x29f   : > { %1761 = vmatprep.subr.bf16.mxu1 %v2841_v30 }
 0x2a2   : > { %1762 = vmatpush1.bf16.msra.mxu1 %v2839_v32 }
 0x2a3   : > { %1763 = vmatprep.subr.bf16.mxu1 %v2847_v34 }
 0x2a6   : > { %1764 = vmatpush1.bf16.msra.mxu1 %v2845_v36 }
 0x2a7   : > { %1765 = vmatprep.subr.bf16.mxu1 %v2853_v38 }
 0x2aa   : > { %1766 = vmatpush1.bf16.msra.mxu1 %v2851_v40 }
 0x2ab   : > { %1767 = vmatprep.subr.bf16.mxu1 %v2859_v44 }
 0x2ae   : > { %1768 = vmatpush1.bf16.msra.mxu1 %v2857_v43 }
 0x2af   : > { %1769 = vmatprep.subr.bf16.mxu1 %v2865_v46 }
 0x2b2   : > { %1770 = vmatpush1.bf16.msra.mxu1 %v2863_v48 }
 0x2b3   : > { %1771 = vmatprep.subr.bf16.mxu1 %v2871_v50 }
 0x2b6   : > { %1772 = vmatpush1.bf16.msra.mxu1 %v2869_v52 }
 0x2b7   : > { %1773 = vmatprep.subr.bf16.mxu1 %v2877_v54 }
 0x2ba   : > { %1774 = vmatpush2.bf16.msra.mxu1 %v2875_v56 }
 0x2bb   : > { %1775 = vmatprep.subr.bf16.mxu1 %v2883_v58 }
 0x2be   : > { %1776 = vmatpush2.bf16.msra.mxu1 %v2881_v60 }
 0x2bf   : > { %1777 = vmatprep.subr.bf16.mxu1 %v2889_v62 }
 0x2c2   : > { %1778 = vmatpush2.bf16.msra.mxu1 %v2887_v0 }
 0x2c3   : > { %1779 = vmatprep.subr.bf16.mxu1 %v2895_v2 }
 0x2c6   : > { %1780 = vmatpush2.bf16.msra.mxu1 %v2893_v4 }
 0x2c7   : > { %1781 = vmatprep.subr.bf16.mxu1 %v2901_v6 }
 0x2ca   : > { %1782 = vmatpush2.bf16.msra.mxu1 %v2899_v9 }
 0x2cb   : > { %1783 = vmatprep.subr.bf16.mxu1 %v2907_v11  ;;  %v1305_v11 = vunpack.c.l.s4 %v3068_v10  ;;  %v2949_v10 = vld [vmem:[%s3835_s5 + $0xc0] sm:$0xff]  }
 0x2cd   : > { %v1306_v12 = vunpack.c.0.s8 %v1305_v11  ;;  %v2950_v11 = vld [vmem:[%s3835_s5] sm:$0xff]  }
 0x2ce   : > { %1784 = vmatpush2.bf16.msra.mxu1 %v2905_v13 }
 0x2cf   : > { %1785 = vmatprep.subr.bf16.mxu1 %v2913_v15  ;;  %v3614_v14 = vsub.s32 %v1306_v12, %v3250_v27  ;;  %v2951_v12 = vld [vmem:[%s3835_s5 + $0x80] sm:$0xff]  }
 0x2d2   : > { %1786 = vmatpush2.bf16.msra.mxu1 %v2911_v17 }
 0x2d3   : > { %1787 = vmatprep.subr.bf16.mxu1 %v2919_v20 }
 0x2d6   : > { %1788 = vmatpush2.bf16.msra.mxu1 %v2917_v21 }
 0x359   : > { %v1252_v26 = vpop.f32.mrf.mxu1 }
 0x35a   : > { %v3599_v28 = vadd.f32 %v1252_v26, %v1131_v24 }
 0x35b   : > { %v1254_v29 = vpop.f32.mrf.mxu1 }
 0x35c   : > { %v1259_v30 = vsel %vm1083_vm3, %v3599_v28, 0.0  ;;  %v1275_v31 = vmul.f32 %v3599_v28, %v3599_v28  ;;  %v3605_v32 = vadd.f32 %v1254_v29, %v1135_v25 }
 0x35d   : > { %v1260_v33 = vrot.slane %v1259_v30, 4  ;;  %v1256_v34 = vpop.f32.mrf.mxu1 }
 0x35e   : > { %v1277_v35 = vsel %vm1083_vm3, %v1275_v31, 0.0  ;;  %v1266_v36 = vsel %vm1083_vm3, %v3605_v32, 0.0  ;;  %v1276_v37 = vmul.f32 %v3605_v32, %v3605_v32 }
 0x35f   : > { %v1261_v38 = vadd.f32 %v1260_v33, %v1259_v30  ;;  %v1278_v39 = vrot.slane %v1277_v35, 4  ;;  %v1267_v40 = vrot.slane %v1266_v36, 4  ;;  %v1257_v41 = vpop.f32.mrf.mxu1  ;;  %v299_v30 = vld [vmem:[%s3836_s6 + $0x8] sm:$0x3] }
 0x360   : > { %v1284_v42 = vsel %vm1083_vm3, %v1276_v37, 0.0 }
 0x361   : > { %v1262_v43 = vrot.slane %v1261_v38, 2  ;;  %v1279_v44 = vadd.f32 %v1278_v39, %v1277_v35  ;;  %v1268_v45 = vadd.f32 %v1267_v40, %v1266_v36  ;;  %v1285_v46 = vrot.slane %v1284_v42, 4 }
 0x363   : > { %v1263_v47 = vadd.f32 %v1262_v43, %v1261_v38  ;;  %v1280_v48 = vrot.slane %v1279_v44, 2  ;;  %v1269_v49 = vrot.slane %v1268_v45, 2  ;;  %v1286_v50 = vadd.f32 %v1285_v46, %v1284_v42  ;;  %v2922_v46 = vld [vmem:[%s3835_s5 + $0x38] sm:$0xff]  }
 0x365   : > { %v1264_v51 = vrot.slane %v1263_v47, 1  ;;  %v1281_v52 = vadd.f32 %v1280_v48, %v1279_v44  ;;  %v1270_v53 = vadd.f32 %v1269_v49, %v1268_v45  ;;  %v1287_v54 = vrot.slane %v1286_v50, 2  ;;  %v2924_v48 = vld [vmem:[%s3835_s5 + $0x70] sm:$0xff]  }
 0x366   : > { %v2925_v49 = vld [vmem:[%s3835_s5 + $0xf0] sm:$0xff]  }
 0x367   : > { %v1265_v55 = vadd.f32 %v1264_v51, %v1263_v47  ;;  %v1282_v56 = vrot.slane %v1281_v52, 1  ;;  %v1271_v57 = vrot.slane %v1270_v53, 1  ;;  %v1288_v58 = vadd.f32 %v1287_v54, %v1286_v50  ;;  %v2923_v47 = vld [vmem:[%s3835_s5 + $0xb8] sm:$0xff]   ;;  %v2926_v50 = vld [vmem:[%s3835_s5 + $0x30] sm:$0xff]   ;;  %v2930_v54 = vld [vmem:[%s3835_s5 + $0x28] sm:$0xff]  }
 0x368   : > { %v2927_v51 = vld [vmem:[%s3835_s5 + $0xb0] sm:$0xff]  }
 0x369   : > { %v1273_v59 = vmul.f32 0.5, %v1265_v55  ;;  %v1283_v60 = vadd.f32 %v1282_v56, %v1281_v52  ;;  %v1272_v61 = vadd.f32 %v1271_v57, %v1270_v53  ;;  %v1289_v62 = vrot.slane %v1288_v58, 1  ;;  %v2928_v52 = vld [vmem:[%s3835_s5 + $0x68] sm:$0xff]   ;;  %v2932_v56 = vld [vmem:[%s3835_s5 + $0x60] sm:$0xff]  }
 0x36a   : > { %v2929_v53 = vld [vmem:[%s3835_s5 + $0xe8] sm:$0xff]   ;;  %v2933_v57 = vld [vmem:[%s3835_s5 + $0xe0] sm:$0xff]  }
 0x36b   : > { %v1291_v63 = vmul.f32 0.5, %v1283_v60  ;;  %v1293_v0 = vmul.f32 %v1273_v59, %v1273_v59  ;;  %v1274_v1 = vmul.f32 0.5, %v1272_v61  ;;  %v1290_v2 = vadd.f32 %v1289_v62, %v1288_v58  ;;  %v2931_v55 = vld [vmem:[%s3835_s5 + $0xa8] sm:$0xff]   ;;  %v2934_v58 = vld [vmem:[%s3835_s5 + $0x20] sm:$0xff]   ;;  %v2936_v60 = vld [vmem:[%s3835_s5 + $0x58] sm:$0xff]  }
 0x36c   : > { %v2937_v61 = vld [vmem:[%s3835_s5 + $0xd8] sm:$0xff]  }
 0x36d   : > { %v1295_v3 = vsub.f32 %v1291_v63, %v1293_v0  ;;  %v1292_v4 = vmul.f32 0.5, %v1290_v2  ;;  %v1294_v5 = vmul.f32 %v1274_v1, %v1274_v1  ;;  %v2938_v62 = vld [vmem:[%s3835_s5 + $0x18] sm:$0xff]   ;;  %v2940_v0 = vld [vmem:[%s3835_s5 + $0x50] sm:$0xff]  }
 0x36e   : > { %v2939_v63 = vld [vmem:[%s3835_s5 + $0x98] sm:$0xff]   ;;  %v2942_v2 = vld [vmem:[%s3835_s5 + $0x10] sm:$0xff]  }
 0x36f   : > { %v1297_v6 = vadd.f32 1e-05, %v1295_v3  ;;  %v1296_v8 = vsub.f32 %v1292_v4, %v1294_v5  ;;  %v2943_v3 = vld [vmem:[%s3835_s5 + $0x90] sm:$0xff]   ;;  %v2944_v4 = vld [vmem:[%s3835_s5 + $0x48] sm:$0xff]  }
 0x370   : > { %v2945_v5 = vld [vmem:[%s3835_s5 + $0xc8] sm:$0xff]  }
 0x371   : > { %v1298_v9 = vadd.f32 1e-05, %v1296_v8  ;;  %2954 = vrsqrt.f32 %v1297_v6  ;;  %v2946_v6 = vld [vmem:[%s3835_s5 + $0x8] sm:$0xff]  }
 0x372   : > { %v2947_v8 = vld [vmem:[%s3835_s5 + $0x88] sm:$0xff]  }
 0x373   : > { %2956 = vrsqrt.f32 %v1298_v9  ;;  %v2948_v9 = vld [vmem:[%s3835_s5 + $0x40] sm:$0xff]  }
 0x37e   : > { %v2955_v13 = vpop.eup %2954 }
 0x380   : > { %v2957_v15 = vpop.eup %2956 }
 0x381   : > { %v1303_v16 = vcombine.low %v2955_v13, %v2957_v15  ;;  %v3729_v13 = vsub.s32 2, %v3250_v27  ;;  %v300_v15 = vld [vmem:[%s3836_s6 + $0xa] sm:$0xf] }
 0x383   : > { %v1310_v17 = vrot.slane %v1303_v16, %v3614_v14  ;;  %v3735_v16 = vsub.s32 3, %v3250_v27 }
 0x385   : > { %v1317_v19 = vrot.slane %v1310_v17, %v3614_v14  ;;  %v1379_v17 = vrot.slane %v300_v15, %v3392_v7 }
 0x387   : > { %v1319_v20 = vmul.f32 %v1317_v19, %v298_v18  ;;  %v1387_v18 = vrot.slane %v300_v15, %v3729_v13 }
 0x389   : > { %v1324_v21 = vrot.slane %v1319_v20, %v3392_v7  ;;  %v1328_v22 = vrot.slane %v1319_v20, %v3595_v23 }
 0x38b   : > { %v1333_v24 = vmul.f32 %v1324_v21, %v1273_v59  ;;  %v1334_v25 = vmul.f32 %v1328_v22, %v1274_v1  ;;  %v1331_v34 = vmul.f32 %v1324_v21, %v3599_v28  ;;  %v1332_v35 = vmul.f32 %v1328_v22, %v3605_v32  ;;  %v2920_v28 = vld [vmem:[%s3835_s5 + $0x78] sm:$0xff]   ;;  %v2935_v59 = vld [vmem:[%s3835_s5 + $0xa0] sm:$0xff]   ;;  %v2941_v1 = vld [vmem:[%s3835_s5 + $0xd0] sm:$0xff]  }
 0x38c   : > { %v2921_v32 = vld [vmem:[%s3835_s5 + $0xf8] sm:$0xff]   ;;  %2632 = vmatprep.subr.bf16.mxu0 %v2920_v28  ;;  %v1383_v21 = vrot.slane %v300_v15, %v3595_v23  ;;  %v1391_v22 = vrot.slane %v300_v15, %v3735_v16 }
 0x38d   : > { %v1337_v26 = vcombine.low %v1333_v24, %v1334_v25  ;;  %2654 = vmatprep.subr.bf16.mxu1 %v2921_v32 }
 0x38f   : > { %v1344_v29 = vrot.slane %v1337_v26, %v3614_v14 }
 0x391   : > { %v1351_v31 = vrot.slane %v1344_v29, %v3614_v14 }
 0x393   : > { %v1353_v33 = vsub.f32 %v299_v30, %v1351_v31 }
 0x395   : > { %v1358_v36 = vrot.slane %v1353_v33, %v3392_v7  ;;  %v1362_v37 = vrot.slane %v1353_v33, %v3595_v23 }
 0x397   : > { %v1366_v38 = vadd.f32 %v1362_v37, %v1332_v35  ;;  %v1365_v39 = vadd.f32 %v1358_v36, %v1331_v34 }
 0x399   : > { %vm1368_vm5 = vcmp.gt.f32.partialorder %v1366_v38, 0.0  ;;  %v1370_v40 = vmul.f32 0.2, %v1366_v38  ;;  %vm1367_vm6 = vcmp.gt.f32.partialorder %v1365_v39, 0.0  ;;  %v1369_v41 = vmul.f32 0.2, %v1365_v39 }
 0x39b   : > { %v1372_v42 = vsel %vm1368_vm5, %v1366_v38, %v1370_v40  ;;  %v1371_v43 = vsel %vm1367_vm6, %v1365_v39, %v1369_v41 }
 0x39c   : > { %v1374_v44 = vpack.c.bf16 %v1372_v42, %v1372_v42  ;;  %v1373_v45 = vpack.c.bf16 %v1371_v43, %v1371_v43 }
 0x39e   : > { %1748 = vmatprep.mubr.bf16.mxu0 %v1374_v44  ;;  %1789 = vmatprep.mubr.bf16.mxu1 %v1374_v44 }
 0x39f   : > { %1749 = vmatmul.mubr.bf16.vlgmr.msra.gmra.mxu0 %v1373_v45  ;;  %1790 = vmatmul.mubr.bf16.vlgmr.msra.gmra.mxu1 %v1373_v45 }
 0x3a0   : > { %2633 = vmatpush3.bf16.msra.mxu0 %v2922_v46  ;;  %2655 = vmatpush3.bf16.msra.mxu1 %v2923_v47 }
 0x3a1   : > { %2634 = vmatprep.subr.bf16.mxu0 %v2924_v48  ;;  %2656 = vmatprep.subr.bf16.mxu1 %v2925_v49 }
 0x3a4   : > { %2635 = vmatpush3.bf16.msra.mxu0 %v2926_v50  ;;  %2657 = vmatpush3.bf16.msra.mxu1 %v2927_v51 }
 0x3a5   : > { %2636 = vmatprep.subr.bf16.mxu0 %v2928_v52  ;;  %2658 = vmatprep.subr.bf16.mxu1 %v2929_v53 }
 0x3a8   : > { %2637 = vmatpush3.bf16.msra.mxu0 %v2930_v54  ;;  %2659 = vmatpush3.bf16.msra.mxu1 %v2931_v55 }
 0x3a9   : > { %2638 = vmatprep.subr.bf16.mxu0 %v2932_v56  ;;  %2660 = vmatprep.subr.bf16.mxu1 %v2933_v57 }
 0x3ac   : > { %2639 = vmatpush3.bf16.msra.mxu0 %v2934_v58  ;;  %2661 = vmatpush3.bf16.msra.mxu1 %v2935_v59 }
 0x3ad   : > { %2640 = vmatprep.subr.bf16.mxu0 %v2936_v60  ;;  %2662 = vmatprep.subr.bf16.mxu1 %v2937_v61 }
 0x3b0   : > { %2641 = vmatpush3.bf16.msra.mxu0 %v2938_v62  ;;  %2663 = vmatpush3.bf16.msra.mxu1 %v2939_v63 }
 0x3b1   : > { %2642 = vmatprep.subr.bf16.mxu0 %v2940_v0  ;;  %2664 = vmatprep.subr.bf16.mxu1 %v2941_v1 }
 0x3b4   : > { %2643 = vmatpush3.bf16.msra.mxu0 %v2942_v2  ;;  %2665 = vmatpush3.bf16.msra.mxu1 %v2943_v3 }
 0x3b5   : > { %2644 = vmatprep.subr.bf16.mxu0 %v2944_v4  ;;  %2666 = vmatprep.subr.bf16.mxu1 %v2945_v5 }
 0x3b8   : > { %2645 = vmatpush3.bf16.msra.mxu0 %v2946_v6  ;;  %2667 = vmatpush3.bf16.msra.mxu1 %v2947_v8 }
 0x3b9   : > { %2646 = vmatprep.subr.bf16.mxu0 %v2948_v9  ;;  %2668 = vmatprep.subr.bf16.mxu1 %v2949_v10 }
 0x3bc   : > { %2647 = vmatpush3.bf16.msra.mxu0 %v2950_v11  ;;  %2669 = vmatpush3.bf16.msra.mxu1 %v2951_v12 }
 0x45f   : > { %v1750_v19 = vpop.f32.mrf.mxu0  ;;  %v1791_v20 = vpop.f32.mrf.mxu1 }
 0x460   : > { %v3741_v24 = vadd.f32 %v1750_v19, %v1379_v17  ;;  %v3743_v25 = vadd.f32 %v1791_v20, %v1387_v18 }
 0x461   : > { %v1752_v26 = vpop.f32.mrf.mxu0  ;;  %v1793_v29 = vpop.f32.mrf.mxu1 }
 0x462   : > { %v1798_v27 = vsel %vm1083_vm3, %v3741_v24, 0.0  ;;  %v1830_v30 = vmul.f32 %v3741_v24, %v3741_v24  ;;  %v1812_v31 = vsel %vm1083_vm3, %v3743_v25, 0.0  ;;  %v1832_v33 = vmul.f32 %v3743_v25, %v3743_v25 }
 0x463   : > { %v1799_v34 = vrot.slane %v1798_v27, 4  ;;  %v1813_v35 = vrot.slane %v1812_v31, 4  ;;  %v3753_v36 = vadd.f32 %v1752_v26, %v1383_v21  ;;  %v3755_v37 = vadd.f32 %v1793_v29, %v1391_v22  ;;  %v1754_v38 = vpop.f32.mrf.mxu0  ;;  %v1795_v39 = vpop.f32.mrf.mxu1 }
 0x464   : > { %v1834_v40 = vsel %vm1083_vm3, %v1830_v30, 0.0  ;;  %v1848_v41 = vsel %vm1083_vm3, %v1832_v33, 0.0 }
 0x465   : > { %v1800_v42 = vadd.f32 %v1799_v34, %v1798_v27  ;;  %v1835_v43 = vrot.slane %v1834_v40, 4  ;;  %v1814_v44 = vadd.f32 %v1813_v35, %v1812_v31  ;;  %v1849_v45 = vrot.slane %v1848_v41, 4  ;;  %v1755_v28 = vpop.f32.mrf.mxu0  ;;  %v1796_v32 = vpop.f32.mrf.mxu1 }
 0x466   : > { %v1805_v46 = vsel %vm1083_vm3, %v3753_v36, 0.0  ;;  %v1831_v47 = vmul.f32 %v3753_v36, %v3753_v36  ;;  %v1819_v48 = vsel %vm1083_vm3, %v3755_v37, 0.0  ;;  %v1833_v49 = vmul.f32 %v3755_v37, %v3755_v37 }
 0x467   : > { %v1801_v50 = vrot.slane %v1800_v42, 2  ;;  %v1836_v51 = vadd.f32 %v1835_v43, %v1834_v40  ;;  %v1815_v52 = vrot.slane %v1814_v44, 2  ;;  %v1850_v53 = vadd.f32 %v1849_v45, %v1848_v41 }
 0x468   : > { %v1806_v54 = vrot.slane %v1805_v46, 4  ;;  %v1841_v55 = vsel %vm1083_vm3, %v1831_v47, 0.0  ;;  %v1820_v56 = vrot.slane %v1819_v48, 4  ;;  %v1855_v57 = vsel %vm1083_vm3, %v1833_v49, 0.0 }
 0x469   : > { %v1802_v58 = vadd.f32 %v1801_v50, %v1800_v42  ;;  %v1837_v59 = vrot.slane %v1836_v51, 2  ;;  %v1816_v60 = vadd.f32 %v1815_v52, %v1814_v44  ;;  %v1851_v61 = vrot.slane %v1850_v53, 2 }
 0x46a   : > { %v1807_v62 = vadd.f32 %v1806_v54, %v1805_v46  ;;  %v1842_v63 = vrot.slane %v1841_v55, 4  ;;  %v1821_v0 = vadd.f32 %v1820_v56, %v1819_v48  ;;  %v1856_v1 = vrot.slane %v1855_v57, 4 }
 0x46b   : > { %v1803_v2 = vrot.slane %v1802_v58, 1  ;;  %v1838_v3 = vadd.f32 %v1837_v59, %v1836_v51  ;;  %v1817_v4 = vrot.slane %v1816_v60, 1  ;;  %v1852_v5 = vadd.f32 %v1851_v61, %v1850_v53 }
 0x46c   : > { %v1808_v6 = vrot.slane %v1807_v62, 2  ;;  %v1843_v8 = vadd.f32 %v1842_v63, %v1841_v55  ;;  %v1822_v9 = vrot.slane %v1821_v0, 2  ;;  %v1857_v10 = vadd.f32 %v1856_v1, %v1855_v57 }
 0x46d   : > { %v1804_v11 = vadd.f32 %v1803_v2, %v1802_v58  ;;  %v1839_v12 = vrot.slane %v1838_v3, 1  ;;  %v1818_v15 = vadd.f32 %v1817_v4, %v1816_v60  ;;  %v1853_v17 = vrot.slane %v1852_v5, 1  ;;  %v301_v4 = vld [vmem:[%s3836_s6 + $0xe] sm:$0xf] }
 0x46e   : > { %v1809_v18 = vadd.f32 %v1808_v6, %v1807_v62  ;;  %v1844_v19 = vrot.slane %v1843_v8, 2  ;;  %v1823_v20 = vadd.f32 %v1822_v9, %v1821_v0  ;;  %v1858_v21 = vrot.slane %v1857_v10, 2 }
 0x46f   : > { %v1826_v22 = vmul.f32 0.5, %v1804_v11  ;;  %v1840_v26 = vadd.f32 %v1839_v12, %v1838_v3  ;;  %v1828_v29 = vmul.f32 0.5, %v1818_v15  ;;  %v1854_v27 = vadd.f32 %v1853_v17, %v1852_v5 }
 0x470   : > { %v1810_v30 = vrot.slane %v1809_v18, 1  ;;  %v1845_v31 = vadd.f32 %v1844_v19, %v1843_v8  ;;  %v1824_v33 = vrot.slane %v1823_v20, 1  ;;  %v1859_v34 = vadd.f32 %v1858_v21, %v1857_v10 }
 0x471   : > { %v1862_v35 = vmul.f32 0.5, %v1840_v26  ;;  %v1866_v38 = vmul.f32 %v1826_v22, %v1826_v22  ;;  %v1864_v39 = vmul.f32 0.5, %v1854_v27  ;;  %v1868_v40 = vmul.f32 %v1828_v29, %v1828_v29 }
 0x472   : > { %v1811_v41 = vadd.f32 %v1810_v30, %v1809_v18  ;;  %v1846_v42 = vrot.slane %v1845_v31, 1  ;;  %v1825_v43 = vadd.f32 %v1824_v33, %v1823_v20  ;;  %v1860_v44 = vrot.slane %v1859_v34, 1  ;;  %v302_v30 = vld [vmem:[%s3836_s6 + $0x12] sm:$0xf] }
 0x473   : > { %v1870_v45 = vsub.f32 %v1862_v35, %v1866_v38  ;;  %v1872_v28 = vsub.f32 %v1864_v39, %v1868_v40 }
 0x474   : > { %v1827_v32 = vmul.f32 0.5, %v1811_v41  ;;  %v1847_v46 = vadd.f32 %v1846_v42, %v1845_v31  ;;  %v1829_v47 = vmul.f32 0.5, %v1825_v43  ;;  %v1861_v48 = vadd.f32 %v1860_v44, %v1859_v34 }
 0x475   : > { %v1874_v49 = vadd.f32 1e-05, %v1870_v45  ;;  %v1876_v54 = vadd.f32 1e-05, %v1872_v28 }
 0x476   : > { %v1863_v50 = vmul.f32 0.5, %v1847_v46  ;;  %v1867_v51 = vmul.f32 %v1827_v32, %v1827_v32  ;;  %v1865_v52 = vmul.f32 0.5, %v1861_v48  ;;  %v1869_v53 = vmul.f32 %v1829_v47, %v1829_v47 }
 0x477   : > { %2958 = vrsqrt.f32 %v1874_v49  ;;  %v2524_v49 = vld [vmem:[%s3836_s6 + $0x16] ss:$0 sm:$0xff] }
 0x478   : > { %v1871_v55 = vsub.f32 %v1863_v50, %v1867_v51  ;;  %v1873_v56 = vsub.f32 %v1865_v52, %v1869_v53  ;;  %2960 = vrsqrt.f32 %v1876_v54 }
 0x47a   : > { %v1875_v57 = vadd.f32 1e-05, %v1871_v55  ;;  %v1877_v58 = vadd.f32 1e-05, %v1873_v56 }
 0x47c   : > { %2962 = vrsqrt.f32 %v1875_v57 }
 0x47d   : > { %2964 = vrsqrt.f32 %v1877_v58 }
 0x484   : > { %v2959_v59 = vpop.eup %2958 }
 0x485   : > { %v2961_v60 = vpop.eup %2960 }
 0x489   : > { %v2963_v61 = vpop.eup %2962 }
 0x48a   : > { %v2965_v62 = vpop.eup %2964  ;;  %v1886_v63 = vcombine.low %v2959_v59, %v2963_v61 }
 0x48b   : > { %v1887_v0 = vcombine.low %v2961_v60, %v2965_v62 }
 0x48c   : > { %v1894_v1 = vrot.slane %v1886_v63, %v3614_v14 }
 0x48d   : > { %v1901_v2 = vrot.slane %v1887_v0, %v3614_v14 }
 0x48f   : > { %v1902_v3 = vcombine.low %v1894_v1, %v1901_v2 }
 0x491   : > { %v1909_v5 = vrot.slane %v1902_v3, %v3614_v14 }
 0x493   : > { %v1911_v6 = vmul.f32 %v1909_v5, %v301_v4 }
 0x495   : > { %v1916_v8 = vrot.slane %v1911_v6, %v3392_v7  ;;  %v1920_v9 = vrot.slane %v1911_v6, %v3595_v23  ;;  %v1924_v10 = vrot.slane %v1911_v6, %v3729_v13  ;;  %v1928_v11 = vrot.slane %v1911_v6, %v3735_v16 }
 0x497   : > { %v1937_v12 = vmul.f32 %v1916_v8, %v1826_v22  ;;  %v1938_v15 = vmul.f32 %v1920_v9, %v1827_v32  ;;  %v1939_v17 = vmul.f32 %v1924_v10, %v1828_v29  ;;  %v1940_v18 = vmul.f32 %v1928_v11, %v1829_v47 }
 0x498   : > { %v1936_v34 = vmul.f32 %v1928_v11, %v3755_v37  ;;  %v1934_v22 = vmul.f32 %v1920_v9, %v3753_v36  ;;  %v1933_v29 = vmul.f32 %v1916_v8, %v3741_v24  ;;  %v1935_v35 = vmul.f32 %v1924_v10, %v3743_v25 }
 0x499   : > { %v1945_v19 = vcombine.low %v1937_v12, %v1938_v15  ;;  %v1946_v20 = vcombine.low %v1939_v17, %v1940_v18 }
 0x49b   : > { %v1953_v21 = vrot.slane %v1945_v19, %v3614_v14  ;;  %v1960_v26 = vrot.slane %v1946_v20, %v3614_v14 }
 0x49d   : > { %v1961_v27 = vcombine.low %v1953_v21, %v1960_v26 }
 0x49f   : > { %v1968_v31 = vrot.slane %v1961_v27, %v3614_v14 }
 0x4a1   : > { %v1970_v33 = vsub.f32 %v302_v30, %v1968_v31 }
 0x4a3   : > { %v1987_v38 = vrot.slane %v1970_v33, %v3735_v16  ;;  %v1979_v39 = vrot.slane %v1970_v33, %v3595_v23  ;;  %v1975_v40 = vrot.slane %v1970_v33, %v3392_v7  ;;  %v1983_v41 = vrot.slane %v1970_v33, %v3729_v13 }
 0x4a5   : > { %v1995_v42 = vadd.f32 %v1987_v38, %v1936_v34  ;;  %v1993_v43 = vadd.f32 %v1979_v39, %v1934_v22  ;;  %v1992_v14 = vadd.f32 %v1975_v40, %v1933_v29  ;;  %v1994_v44 = vadd.f32 %v1983_v41, %v1935_v35 }
 0x4a7   : > { %vm1997_vm7 = vcmp.gt.f32.partialorder %v1993_v43, 0.0  ;;  %v2001_v37 = vmul.f32 0.2, %v1993_v43  ;;  %vm1999_vm8 = vcmp.gt.f32.partialorder %v1995_v42, 0.0  ;;  %v2003_v36 = vmul.f32 0.2, %v1995_v42 }
 0x4a8   : > { %vm1996_vm9 = vcmp.gt.f32.partialorder %v1992_v14, 0.0  ;;  %v2000_v24 = vmul.f32 0.2, %v1992_v14  ;;  %vm1998_vm10 = vcmp.gt.f32.partialorder %v1994_v44, 0.0  ;;  %v2002_v25 = vmul.f32 0.2, %v1994_v44 }
 0x4a9   : > { %v2005_v45 = vsel %vm1997_vm7, %v1993_v43, %v2001_v37  ;;  %v2007_v16 = vsel %vm1999_vm8, %v1995_v42, %v2003_v36 }
 0x4aa   : > { %v2009_v28 = vpack.c.bf16 %v2005_v45, %v2005_v45  ;;  %v2011_v23 = vpack.c.bf16 %v2007_v16, %v2007_v16  ;;  %v2004_v32 = vsel %vm1996_vm9, %v1992_v14, %v2000_v24  ;;  %v2006_v7 = vsel %vm1998_vm10, %v1994_v44, %v2002_v25 }
 0x4ab   : > { %v2008_v46 = vpack.c.bf16 %v2004_v32, %v2004_v32  ;;  %v2010_v13 = vpack.c.bf16 %v2006_v7, %v2006_v7 }
 0x4ac   : > { %2242 = vmatprep.mubr.bf16.mxu0 %v2009_v28  ;;  %2282 = vmatprep.mubr.bf16.mxu1 %v2011_v23 }
 0x4ad   : > { %2243 = vmatmul.mubr.bf16.vlgmr.msra.gmra.mxu0 %v2008_v46  ;;  %2283 = vmatmul.mubr.bf16.vlgmr.msra.gmra.mxu1 %v2010_v13 }
 0x56d   : > { %v2648_v47 = vpop.f32.mrf.mxu0  ;;  %v2670_v48 = vpop.f32.mrf.mxu1 }
 0x56f   : > { %v2649_v50 = vpop.f32.mrf.mxu0  ;;  %v2671_v51 = vpop.f32.mrf.mxu1 }
 0x570   : > { %v2650_v52 = vadd.f32 %v2649_v50, %v2648_v47  ;;  %v2672_v56 = vadd.f32 %v2671_v51, %v2670_v48 }
 0x571   : > { %v2651_v53 = vpop.f32.mrf.mxu0  ;;  %v2673_v54 = vpop.f32.mrf.mxu1 }
 0x572   : > { %v2245_v55 = vadd.f32 %v2650_v52, %v2524_v49 }
 0x573   : > { %v2652_v57 = vpop.f32.mrf.mxu0  ;;  %v2674_v58 = vpop.f32.mrf.mxu1 }
 0x574   : > { %v2285_v59 = vadd.f32 %v2672_v56, %v2245_v55 }
 0x576   : > { %2966 = vtanh.f32 %v2285_v59 }
 0x583   : > { %v2967_v60 = vpop.eup %2966 }
 0x584   : > { %v2292_v61 = vmul.f32 0.01, %v2967_v60 }
 0x586   : > { %2294 = vst.msk [vmem:[%s286_s29] sm:$0x3] %vm2293_vm11, %v2292_v61 }
 0x587   : > { %3007 = shalt.err (!%p3004_p0)
}
 0x588   : > { %s3008_s16 = scalar_lea.hbm %s2307_s14, 32  ;;  %s3012_s22 = scalar_lea.hbm %s3837_s7, 256 }
 0x589   : > { %p3009_p1 = scmp.ne.s32.totalorder %s2307_s14, %s3008_s16  ;;  %p3013_p4 = scmp.lt.s32.totalorder %s2307_s14, %s3837_s7 }
 0x58a   : > { %p3014_p7 = scmp.lt.s32.totalorder %s3012_s22, %s3008_s16 }
 0x58b   : > { %p3010_p2 = pnand %p3009_p1, %p3148_p5 }
 0x58c   : > { %p3015_p6 = por %p3014_p7, %p3013_p4 }
 0x58d   : > { %p3011_p3 = pneg %p3010_p2 }
 0x58f   : > { %p3016_p8 = pnand %p3015_p6, %p3011_p3 }
 0x591   : > { %3019 = shalt.err (!%p3016_p8)
}
 0x592   : > { %2693 = dma.vmem_to_hbm [thread:$0]  (%p3148_p5), %s2310_s8, 32, %s2307_s14, %s2296_s15  }
 0x593 PF: > { %p2705_p9 = scmp.ge.s32.totalorder %s3058_s27, 2  ;;  %s2321_s21 = sand.u32 1, %s3046_s24  }
 0x594   : > { %p3841_p10 = scmp.ne.s32.totalorder %s3839_s12, 0  ;;  %s2322_s9 = scalar_lea.sflag [#allocation4], %s2321_s21 }
 0x596   : > { %p2700_p11 = pnand %p2705_p9, %p3841_p10 }
 0x598   : > { %p2701_p12 = pneg %p2700_p11 }
 0x59a   : > { %3041 = dma.done.wait (%p2701_p12), %s2322_s9, 32  }
 0x59b   : > { %3043 = vsyncadd (%p2701_p12), %s2322_s9, 4294967264  ;;  %p18_p13 = scmp.ge.s32.totalorder %s3135_s30, 10   ;;  %s3842_s24 = smov %s3050_s25 }
 0x59c   : > { %s3843_s25 = smov %s3054_s26  ;;  %s3844_s26 = smov %s3146_s10 }
 0x59d   : > { %s3845_s27 = smov %s3135_s30  ;;  %20 = sbr.rel (!%p18_p13) target bundleno = 4 (0x4), region = 88 }
 0x5a2   :  { %2327 = vsyncpa [#allocation3], 1 }
 0x5a3   :  { %2329 = vsyncpa [#allocation3 + $0x1], 1 }
 0x5a4   :  { %2330 = vsyncpa [#allocation4], 1 }
 0x5a5   :  { %2332 = vsyncpa [#allocation4 + $0x1], 1 }

</bundles_post_ra>
